<compile_context>
chip_gen: v5e
topology: v5e:2x2
jax: 0.10.0
libtpu: 0.0.40
codegen_flags: <defaults>
</compile_context>

<pallas_src>
import functools

import jax
import jax.numpy as jnp
from jax.experimental import pallas as pl
from jax.experimental.pallas import tpu as pltpu


# ------------------------- StandardModel configuration ----------------------
INPUT_SPACE = "RGB"            # self.cnn.input_space
INPUT_RANGE = (0.0, 1.0)       # self.cnn.input_range
MEAN = (0.485, 0.456, 0.406)   # self.cnn.mean
STD = (0.229, 0.224, 0.225)    # self.cnn.std

N_CLASSES = 10
CONV_FILTERS = 32
KSIZE = 3
C_IN = 3

LANE = 128                     # TPU lane width
MAX_M_ROWS = 128               # cap on conv-matmul M block (vreg pressure)


# ------------------------- fused Pallas kernel -------------------------------
def _fused_cnn_kernel(x_ref, wt_ref, bt_ref, wfc_ref, bfc_ref, o_ref,
                      *, H, K, WCP, inv_hw):
    """One block of images per grid step: conv3x3 + bias + ReLU + GAP + linear.

    x_ref  : (b_blk, H+K-1, WCP)  bf16 raw padded images (norm folded into W)
    wt_ref : (K*WCP, W*F)         bf16 fused-K block-Toeplitz conv weights
    bt_ref : (1, W*F)             f32  conv bias tiled over W (norm folded)
    wfc_ref: (W*F, 128)           bf16 classifier weight, W-tiled, lane-padded
    bfc_ref: (1, 128)             f32  classifier bias, lane-padded
    o_ref  : (1, b_blk, 128)      f32  logits for this image block
    """
    b_blk = x_ref.shape[0]
    BH = b_blk * H

    # K row-shifted taps packed along the lane axis -> ONE fused-K MXU matmul
    # (single weight push / result drain per step instead of K small dots).
    xk = jnp.concatenate(
        [x_ref[:, dy:dy + H, :].reshape(BH, WCP) for dy in range(K)], axis=-1)
    acc = jnp.dot(xk, wt_ref[...], preferred_element_type=jnp.float32)  # (BH, W*F)

    feat = jnp.maximum(acc + bt_ref[...], 0.0)                          # bias+ReLU f32

    # Classifier first, GAP second: the W*F-wide reduction rides the MXU; only
    # a (b_blk, H, 128) sublane reduction is left for the VPU/XLU.
    row_logits = jnp.dot(feat.astype(jnp.bfloat16), wfc_ref[...],
                         preferred_element_type=jnp.float32)            # (BH, 128)
    logits = (jnp.sum(row_logits.reshape(b_blk, H, -1), axis=1) * inv_hw
              + bfc_ref[...])                                           # (b_blk, 128)
    o_ref[0] = logits


def fused_cnn_forward(xpad, wt, bt, wfc, bfc, *, H, W, b_blk):
    """pallas_call wrapper: grid over image blocks, weights resident in VMEM."""
    N, Hp, WCP = xpad.shape
    KWCP, WF = wt.shape
    K = KWCP // WCP
    NCP = bfc.shape[1]
    G = N // b_blk

    kernel = functools.partial(_fused_cnn_kernel, H=H, K=K, WCP=WCP,
                               inv_hw=1.0 / (H * W))

    # Advisory only; counts the Toeplitz zero-fill (over-estimates true FLOPs).
    flops = 2 * N * H * (KWCP * WF + WF * NCP)
    bytes_accessed = (2 * (xpad.size + wt.size + wfc.size)
                      + 4 * (bt.size + bfc.size + N * NCP))

    out = pl.pallas_call(
        kernel,
        out_shape=jax.ShapeDtypeStruct((G, b_blk, NCP), jnp.float32),
        grid=(G,),
        in_specs=[
            # one block of padded images per step (auto-pipelined HBM->VMEM DMA)
            pl.BlockSpec((b_blk, Hp, WCP), lambda n: (n, 0, 0)),
            # weights / biases: same block every step -> stay resident in VMEM
            pl.BlockSpec((KWCP, WF), lambda n: (0, 0)),
            pl.BlockSpec((1, WF), lambda n: (0, 0)),
            pl.BlockSpec((WF, NCP), lambda n: (0, 0)),
            pl.BlockSpec((1, NCP), lambda n: (0, 0)),
        ],
        out_specs=pl.BlockSpec((1, b_blk, NCP), lambda n: (n, 0, 0)),
        compiler_params=pltpu.CompilerParams(
            dimension_semantics=("parallel",),       # v7x: blocks over 2 TCs
            vmem_limit_bytes=32 * 1024 * 1024,       # explicit, fits all gens
        ),
        cost_estimate=pl.CostEstimate(flops=flops, transcendentals=0,
                                      bytes_accessed=bytes_accessed),
    )(xpad, wt, bt, wfc, bfc)
    return out.reshape(N, NCP)


# ------------------------- helpers -------------------------------------------
def _round_up(v, m):
    return ((v + m - 1) // m) * m


def _pick_batch_block(n, h):
    """Largest divisor of n with b*h <= MAX_M_ROWS, keeping >= 2 grid steps."""
    cap = max(1, MAX_M_ROWS // max(h, 1))
    best = 1
    for b in range(1, min(n, cap) + 1):
        if n % b == 0 and (n // b >= 2 or n <= 1):
            best = b
    return best


# ------------------------- one-time weight folding / Toeplitz build ----------
def build_kernel_params(params, H, W):
    """Fold (scale, mean, std) into the conv; build lane-padded matmul operands.

    Hoisted out of the per-call forward: run once, reuse across repeated
    (attack-style) forwards.
    """
    scale = 255.0 if max(INPUT_RANGE) == 255 else 1.0
    w_pt = params["w_conv"]                        # (F, C, K, K) PyTorch OIHW
    mean, std = params["mean"], params["std"]      # (C,), (C,)
    F, C, K, _ = w_pt.shape
    w = jnp.transpose(w_pt, (2, 3, 1, 0)).astype(jnp.float32)   # (K, K, C, F)
    w_fold = w * (scale / std)[None, None, :, None]
    b_fold = params["b_conv"] - jnp.einsum("yxcf,c->f", w, mean / std)

    WC = (W + K - 1) * C
    WCP = _round_up(max(WC, LANE), LANE)           # lane-pad contraction dim
    WF = W * F
    NCP = _round_up(max(N_CLASSES, LANE), LANE)    # lane-pad classifier outputs

    # Block-Toeplitz: conv along W becomes a matmul; the K row taps are stacked
    # along the contraction axis so the kernel issues ONE fused-K dot:
    #   wt[dy*WCP + (w+dx)*C + c, w*F + f] = w_fold[dy, dx, c, f]
    eye = jnp.eye(W, dtype=jnp.float32)
    taps = []
    for dy in range(K):
        m = jnp.zeros((WCP, WF), jnp.float32)
        for dx in range(K):
            m = m.at[dx * C:dx * C + W * C, :].add(jnp.kron(eye, w_fold[dy, dx]))
        taps.append(m)
    wt = jnp.concatenate(taps, axis=0)             # (K*WCP, W*F)

    bt = jnp.tile(b_fold, W).reshape(1, WF).astype(jnp.float32)

    wfc = jnp.zeros((WF, NCP), jnp.float32)
    wfc = wfc.at[:, :N_CLASSES].set(jnp.tile(params["w_fc"], (W, 1)))
    bfc = jnp.zeros((1, NCP), jnp.float32).at[0, :N_CLASSES].set(params["b_fc"])

    # Border-padding the RAW image with mean/scale makes the folded conv equal
    # "normalize then zero-pad" of the reference, border pixels included.
    pad_val = (mean / scale).astype(jnp.float32)
    pad_row = jnp.zeros((WCP,), jnp.float32).at[:WC].set(
        jnp.tile(pad_val, W + K - 1))
    pad_base = jnp.broadcast_to(pad_row, (H + K - 1, WCP)).astype(jnp.bfloat16)

    return dict(wt=wt.astype(jnp.bfloat16), bt=bt,
                wfc=wfc.astype(jnp.bfloat16), bfc=bfc, pad_base=pad_base)


@jax.jit
def standard_model_forward(x_nchw, kparams):
    """StandardModel.forward: (N, 3, H, W) float32 in [0,1], NCHW -> logits."""
    x = x_nchw
    if INPUT_SPACE == "BGR":                       # static config; no-op for RGB
        x = x[:, ::-1, :, :]
    # The 255-scale and the (x - mean) / std normalization are folded into the
    # conv weights/bias by build_kernel_params (same static config).

    N, C, H, W = x.shape
    Hp, WCP = kparams["pad_base"].shape
    assert Hp == H + KSIZE - 1, "kernel params built for a different image size"

    # NCHW -> NHWC -> flattened (w, c) rows, pasted into the mean/scale-padded,
    # lane-padded base.  Single fused XLA pass; bf16 halves HBM traffic.
    # TODO(synk): at large H/W do this padding in-kernel into a VMEM scratch.
    x = jnp.transpose(x, (0, 2, 3, 1)).reshape(N, H, W * C).astype(jnp.bfloat16)
    base = jnp.broadcast_to(kparams["pad_base"][None], (N, Hp, WCP))
    P = KSIZE // 2
    xpad = jax.lax.dynamic_update_slice(base, x, (0, P, P * C))

    b_blk = _pick_batch_block(N, H)
    logits = fused_cnn_forward(xpad, kparams["wt"], kparams["bt"],
                               kparams["wfc"], kparams["bfc"],
                               H=H, W=W, b_blk=b_blk)
    return logits[:, :N_CLASSES]


# ------------------------- params & pure-JAX reference -----------------------
def init_params(key):
    k1, k2, k3, k4 = jax.random.split(key, 4)
    return dict(
        w_conv=0.1 * jax.random.normal(k1, (CONV_FILTERS, C_IN, KSIZE, KSIZE),
                                       jnp.float32),
        b_conv=0.1 * jax.random.normal(k2, (CONV_FILTERS,), jnp.float32),
        w_fc=0.1 * jax.random.normal(k3, (CONV_FILTERS, N_CLASSES), jnp.float32),
        b_fc=0.1 * jax.random.normal(k4, (N_CLASSES,), jnp.float32),
        mean=jnp.asarray(MEAN, jnp.float32),
        std=jnp.asarray(STD, jnp.float32),
    )


def reference_forward(x_nchw, params):
    """Pure-JAX reference with the exact StandardModel op order."""
    x = x_nchw
    if INPUT_SPACE == "BGR":
        x = x[:, ::-1, :, :]
    if max(INPUT_RANGE) == 255:
        x = x * 255.0
    mean = params["mean"].reshape(1, -1, 1, 1)
    std = params["std"].reshape(1, -1, 1, 1)
    x = (x - mean) / std
    y = jax.lax.conv_general_dilated(
        x, params["w_conv"], window_strides=(1, 1), padding="SAME",
        dimension_numbers=("NCHW", "OIHW", "NCHW"))
    y = jax.nn.relu(y + params["b_conv"].reshape(1, -1, 1, 1))
    pooled = jnp.mean(y, axis=(2, 3))
    return pooled @ params["w_fc"] + params["b_fc"].reshape(1, -1)


if __name__ == "__main__":
    key = jax.random.PRNGKey(0)
    k_params, k_x = jax.random.split(key)
    params = init_params(k_params)

    # standard image batch: [0, 1] range, RGB, NCHW
    N, H, W = 8, 16, 16
    x = jax.random.uniform(k_x, (N, C_IN, H, W), jnp.float32, 0.0, 1.0)

    kparams = build_kernel_params(params, H, W)    # one-time (hoisted) build

    logits = standard_model_forward(x, kparams)
    jax.block_until_ready(logits)
    assert logits.shape == (N, N_CLASSES) and logits.dtype == jnp.float32

    ref = reference_forward(x, params)
    assert jnp.allclose(logits, ref, atol=2e-2, rtol=2e-2), (
        "mismatch vs reference", logits, ref)

    print("KERNEL_OK")
</pallas_src>

<mosaic_0001>
module attributes {stable_mosaic.version = 11 : i64} {
  func.func @_fused_cnn_kernel(%arg0: i32, %arg1: memref<4x18x128xbf16, #tpu.memory_space<vmem>>, %arg2: memref<384x512xbf16, #tpu.memory_space<vmem>>, %arg3: memref<1x512xf32, #tpu.memory_space<vmem>>, %arg4: memref<512x128xbf16, #tpu.memory_space<vmem>>, %arg5: memref<1x128xf32, #tpu.memory_space<vmem>>, %arg6: memref<1x4x128xf32, #tpu.memory_space<vmem>>) attributes {dimension_semantics = [#tpu.dimension_semantics<parallel>], iteration_bounds = array<i64: 2>, scalar_prefetch = 0 : i64, scratch_operands = 0 : i64, tpu.core_type = #tpu.core_type<tc>, window_params = [{transform_indices = @transform_0, window_bounds = array<i64: 4, 18, 128>}, {pipeline_mode = #tpu.pipeline_mode<synchronous>, transform_indices = @transform_1, window_bounds = array<i64: 384, 512>}, {pipeline_mode = #tpu.pipeline_mode<synchronous>, transform_indices = @transform_2, window_bounds = array<i64: 1, 512>}, {pipeline_mode = #tpu.pipeline_mode<synchronous>, transform_indices = @transform_3, window_bounds = array<i64: 512, 128>}, {pipeline_mode = #tpu.pipeline_mode<synchronous>, transform_indices = @transform_4, window_bounds = array<i64: 1, 128>}, {transform_indices = @transform_5, window_bounds = array<i64: 1, 4, 128>}]} {
    %c0 = arith.constant 0 : index
    %c0_0 = arith.constant 0 : index
    %c0_1 = arith.constant 0 : index
    %0 = vector.load %arg1[%c0, %c0_0, %c0_1] : memref<4x18x128xbf16, #tpu.memory_space<vmem>>, vector<4x16x128xbf16>
    %1 = vector.shape_cast %0 : vector<4x16x128xbf16> to vector<64x128xbf16>
    %c0_2 = arith.constant 0 : index
    %c1 = arith.constant 1 : index
    %c0_3 = arith.constant 0 : index
    %2 = vector.load %arg1[%c0_2, %c1, %c0_3] : memref<4x18x128xbf16, #tpu.memory_space<vmem>>, vector<4x16x128xbf16>
    %3 = vector.shape_cast %2 : vector<4x16x128xbf16> to vector<64x128xbf16>
    %c0_4 = arith.constant 0 : index
    %c2 = arith.constant 2 : index
    %c0_5 = arith.constant 0 : index
    %4 = vector.load %arg1[%c0_4, %c2, %c0_5] : memref<4x18x128xbf16, #tpu.memory_space<vmem>>, vector<4x16x128xbf16>
    %5 = vector.shape_cast %4 : vector<4x16x128xbf16> to vector<64x128xbf16>
    %6 = tpu.concatenate %1, %3, %5 in 1 : vector<64x128xbf16>, vector<64x128xbf16>, vector<64x128xbf16> -> vector<64x384xbf16>
    %c0_6 = arith.constant 0 : index
    %c0_7 = arith.constant 0 : index
    %7 = vector.load %arg2[%c0_6, %c0_7] : memref<384x512xbf16, #tpu.memory_space<vmem>>, vector<384x512xbf16>
    %cst = arith.constant dense<0.000000e+00> : vector<64x512xf32>
    %8 = tpu.matmul %6, %7, %cst {dimension_numbers = #tpu.dot_dimension_numbers<[1], [0], [0], [1], [0, 0, 1, 1], [], []>} : vector<64x384xbf16>, vector<384x512xbf16>, vector<64x512xf32> -> vector<64x512xf32>
    %c0_8 = arith.constant 0 : index
    %c0_9 = arith.constant 0 : index
    %9 = vector.load %arg3[%c0_8, %c0_9] : memref<1x512xf32, #tpu.memory_space<vmem>>, vector<1x512xf32>
    %10 = vector.broadcast %9 : vector<1x512xf32> to vector<64x512xf32>
    %11 = arith.addf %8, %10 : vector<64x512xf32>
    %cst_10 = arith.constant 0.000000e+00 : f32
    %12 = vector.broadcast %cst_10 : f32 to vector<64x512xf32>
    %13 = arith.maximumf %11, %12 : vector<64x512xf32>
    %14 = arith.truncf %13 : vector<64x512xf32> to vector<64x512xbf16>
    %c0_11 = arith.constant 0 : index
    %c0_12 = arith.constant 0 : index
    %15 = vector.load %arg4[%c0_11, %c0_12] : memref<512x128xbf16, #tpu.memory_space<vmem>>, vector<512x128xbf16>
    %cst_13 = arith.constant dense<0.000000e+00> : vector<64x128xf32>
    %16 = tpu.matmul %14, %15, %cst_13 {dimension_numbers = #tpu.dot_dimension_numbers<[1], [0], [0], [1], [0, 0, 1, 1], [], []>} : vector<64x512xbf16>, vector<512x128xbf16>, vector<64x128xf32> -> vector<64x128xf32>
    %17 = vector.shape_cast %16 : vector<64x128xf32> to vector<4x16x128xf32>
    %cst_14 = arith.constant dense<0.000000e+00> : vector<4x128xf32>
    %18 = vector.multi_reduction <add>, %17, %cst_14 [1] : vector<4x16x128xf32> to vector<4x128xf32>
    %cst_15 = arith.constant 3.906250e-03 : f32
    %19 = vector.broadcast %cst_15 : f32 to vector<4x128xf32>
    %20 = arith.mulf %18, %19 : vector<4x128xf32>
    %c0_16 = arith.constant 0 : index
    %c0_17 = arith.constant 0 : index
    %21 = vector.load %arg5[%c0_16, %c0_17] : memref<1x128xf32, #tpu.memory_space<vmem>>, vector<1x128xf32>
    %22 = vector.broadcast %21 : vector<1x128xf32> to vector<4x128xf32>
    %23 = arith.addf %20, %22 : vector<4x128xf32>
    %c0_18 = arith.constant 0 : index
    %c0_19 = arith.constant 0 : index
    %c0_20 = arith.constant 0 : index
    %24 = vector.load %arg6[%c0_18, %c0_19, %c0_20] : memref<1x4x128xf32, #tpu.memory_space<vmem>>, vector<1x4x128xf32>
    %25 = vector.shape_cast %24 : vector<1x4x128xf32> to vector<4x128xf32>
    %26 = vector.shape_cast %23 : vector<4x128xf32> to vector<1x4x128xf32>
    tpu.vector_store %arg6[%c0_18, %c0_19, %c0_20], %26 {strides = array<i32>} : memref<1x4x128xf32, #tpu.memory_space<vmem>>, vector<1x4x128xf32>,
    return
  }
  func.func @transform_0(%arg0: i32) -> (i32, i32, i32) {
    %c0_i32 = arith.constant 0 : i32
    %c0_i32_0 = arith.constant 0 : i32
    %c0_i32_1 = arith.constant 0 : i32
    return %arg0, %c0_i32, %c0_i32_0 : i32, i32, i32
  }
  func.func @transform_1(%arg0: i32) -> (i32, i32) {
    %c0_i32 = arith.constant 0 : i32
    %c0_i32_0 = arith.constant 0 : i32
    %c0_i32_1 = arith.constant 0 : i32
    return %c0_i32, %c0_i32_0 : i32, i32
  }
  func.func @transform_2(%arg0: i32) -> (i32, i32) {
    %c0_i32 = arith.constant 0 : i32
    %c0_i32_0 = arith.constant 0 : i32
    %c0_i32_1 = arith.constant 0 : i32
    return %c0_i32, %c0_i32_0 : i32, i32
  }
  func.func @transform_3(%arg0: i32) -> (i32, i32) {
    %c0_i32 = arith.constant 0 : i32
    %c0_i32_0 = arith.constant 0 : i32
    %c0_i32_1 = arith.constant 0 : i32
    return %c0_i32, %c0_i32_0 : i32, i32
  }
  func.func @transform_4(%arg0: i32) -> (i32, i32) {
    %c0_i32 = arith.constant 0 : i32
    %c0_i32_0 = arith.constant 0 : i32
    %c0_i32_1 = arith.constant 0 : i32
    return %c0_i32, %c0_i32_0 : i32, i32
  }
  func.func @transform_5(%arg0: i32) -> (i32, i32, i32) {
    %c0_i32 = arith.constant 0 : i32
    %c0_i32_0 = arith.constant 0 : i32
    %c0_i32_1 = arith.constant 0 : i32
    return %arg0, %c0_i32, %c0_i32_0 : i32, i32, i32
  }
}

</mosaic_0001>

<bundles_post_ra>
// kernel: standard_model_forward.1
= control target key start
LH: loop header
LB: loop body
LE: loop exit
PB: predicated region body
PF: predicated region fallthrough
CT: control target
= control target key end

     0   :  { %10 = vsyncpa [#allocation3], 0  ;;  %s3923_s0 = inlined_call_operand.vmem [shape: bf16[8,18,128], index: 0, kind: input, shape index: {}]   ;;  %s3924_s1 = inlined_call_operand.vmem [shape: bf16[384,512], index: 1, kind: input, shape index: {}]   ;;  %s3925_s2 = inlined_call_operand.vmem [shape: f32[1,512], index: 2, kind: input, shape index: {}]   ;;  %s3926_s3 = inlined_call_operand.vmem [shape: bf16[512,128], index: 3, kind: input, shape index: {}]   ;;  %s3927_s4 = inlined_call_operand.vmem [shape: f32[1,128], index: 4, kind: input, shape index: {}]   ;;  %s3928_s5 = inlined_call_operand.hbm [shape: f32[2,4,128], index: 5, kind: output, shape index: {}]  }
   0x1   :  { %12 = vsyncpa [#allocation3 + $0x1], 0  ;;  %s2732_s18 = smov 0   ;;  %s2734_s19 = smov 0  }
   0x2   :  { %s2736_s20 = smov 0   ;;  %s2738_s21 = smov 0  }
   0x3 LB: > { %s1921_s22 = sadd.s32 4294967295, %s2700_s21   ;;  %s1922_s23 = sadd.s32 4294967294, %s2700_s21   ;;  %s2700_s21 = sphi %s2738_s21, %s3938_s21   ;;  %s2696_s20 = sphi %s2736_s20, %s3937_s20   ;;  %s2692_s19 = sphi %s2734_s19, %s3936_s19   ;;  %s2688_s18 = sphi %s2732_s18, %s3935_s18  }
   0x4   : > { %s2755_s24 = sadd.s32 1, %s2700_s21   ;;  %s135_s25 = sadd.s32 1, %s2696_s20 }
   0x5   : > { %s132_s26 = ssub.s32 %s2700_s21, %s2755_s24  ;;  %p145_p0 = scmp.ne.s32.totalorder %s2696_s20, %s2692_s19 }
   0x6   : > { %p133_p1 = scmp.eq.s32.totalorder %s132_s26, 0  ;;  %p146_p2 = scmp.eq.s32.totalorder %s1921_s22, 1 }
   0x7   : > { %p151_p3 = scmp.ne.s32.totalorder %s2692_s19, %s2688_s18  ;;  %p152_p4 = scmp.eq.s32.totalorder %s1922_s23, 1 }
   0x8   : > { %s2767_s27 = scalar_select %p133_p1, %s2696_s20, %s135_s25  }
   0x9   : > { %p2769_p5 = por %p146_p2, %p145_p0  ;;  %p2773_p6 = por %p152_p4, %p151_p3 }
   0xa   : > { %p1925_p7 = scmp.ge.s32.totalorder %s2700_s21, 1  ;;  %p192_p8 = scmp.lt.s32.totalorder %s2700_s21, 3 }
   0xc   : > { %p193_p9 = pnand %p1925_p7, %p192_p8 }
   0xd   : > { %s2949_s30 = sshll.u32 (!%p193_p9), %s1921_s22, 2  ;;  %s218_s23 = sand.u32 (!%p193_p9), 1, %s2692_s19  }
   0xe   : > { %196 = sbr.rel (%p193_p9) target bundleno = 548 (0x224), region = 40  ;;  %p222_p10 = scmp.lt.s32.totalorder (!%p193_p9), %s2949_s30, 7 }
   0xf   : > { %s1858_s10 = scalar_lea.hbm (!%p193_p9), %s3928_s5, %s2949_s30  ;;  %s2658_s16 = scalar_lea.hbm (!%p193_p9), %s3928_s5, 8 }
  0x10   : > { %s1862_s13 = sshll.u32 (!%p193_p9), %s1858_s10, 4  ;;  %s1863_s13 = int_to_ptr.hbm [resolvable:$true] %s1862_s13 }
  0x13   : > { %v2063_v0 = vld [vmem:[%s3924_s1 + $0xe0] sm:$0xf]  ;;  %v2499_v1 = vld [vmem:[%s3924_s1 + $0xec] sm:$0xf0]  ;;  %v2497_v9 = vld [vmem:[%s3924_s1 + $0xe4] sm:$0xf] }
  0x14   : > { %v2191_v2 = vld [vmem:[%s3924_s1 + $0x1e0] sm:$0xf]  ;;  %v2064_v3 = vor.u32 %v2499_v1, %v2063_v0  ;;  %v2531_v4 = vld [vmem:[%s3924_s1 + $0x1ec] sm:$0xf0]  ;;  %v2065_v10 = vld [vmem:[%s3924_s1 + $0xf0] sm:$0xf0] }
  0x15   : > { %v2319_v5 = vld [vmem:[%s3924_s1 + $0x2e0] sm:$0xf]  ;;  %v2563_v6 = vld [vmem:[%s3924_s1 + $0x2ec] sm:$0xf0]  ;;  %v2192_v7 = vor.u32 %v2531_v4, %v2191_v2  ;;  %v2068_v12 = vor.u32 %v2497_v9, %v2065_v10  ;;  %v2493_v20 = vld [vmem:[%s3924_s1 + $0xc4] sm:$0xf] }
  0x16   : > { %v2320_v8 = vor.u32 %v2563_v6, %v2319_v5  ;;  %v2047_v11 = vld [vmem:[%s3924_s1 + $0xc0] sm:$0xf]  ;;  %1024 = vmatpush.bf16.msra.mxu0 %v2064_v3  ;;  %v2495_v13 = vld [vmem:[%s3924_s1 + $0xcc] sm:$0xf0]  ;;  %v2049_v22 = vld [vmem:[%s3924_s1 + $0xd0] sm:$0xf0] }
  0x17   : > { %v2175_v14 = vld [vmem:[%s3924_s1 + $0x1c0] sm:$0xf]  ;;  %v2527_v15 = vld [vmem:[%s3924_s1 + $0x1cc] sm:$0xf0]  ;;  %1053 = vmatpush.bf16.msra.mxu1 %v2192_v7  ;;  %v2048_v16 = vor.u32 %v2495_v13, %v2047_v11  ;;  %1111 = vmatpush.bf16.msra.mxu3 %v2068_v12  ;;  %v2052_v25 = vor.u32 %v2493_v20, %v2049_v22  ;;  %v2489_v31 = vld [vmem:[%s3924_s1 + $0xa4] sm:$0xf] }
  0x18   : > { %1082 = vmatpush.bf16.msra.mxu2 %v2320_v8  ;;  %v2176_v17 = vor.u32 %v2527_v15, %v2175_v14  ;;  %v2303_v18 = vld [vmem:[%s3924_s1 + $0x2c0] sm:$0xf]  ;;  %v2559_v19 = vld [vmem:[%s3924_s1 + $0x2cc] sm:$0xf0]  ;;  %v2033_v32 = vld [vmem:[%s3924_s1 + $0xb0] sm:$0xf0] }
  0x19   : > { %v2304_v21 = vor.u32 %v2559_v19, %v2303_v18  ;;  %v2031_v23 = vld [vmem:[%s3924_s1 + $0xa0] sm:$0xf]  ;;  %v2491_v24 = vld [vmem:[%s3924_s1 + $0xac] sm:$0xf0]  ;;  %v2036_v38 = vor.u32 %v2489_v31, %v2033_v32  ;;  %v2485_v42 = vld [vmem:[%s3924_s1 + $0x84] sm:$0xf] }
  0x1a   : > { %v2159_v26 = vld [vmem:[%s3924_s1 + $0x1a0] sm:$0xf]  ;;  %v2523_v27 = vld [vmem:[%s3924_s1 + $0x1ac] sm:$0xf0]  ;;  %1025 = vmatpush.bf16.msra.mxu0 %v2048_v16  ;;  %v2032_v29 = vor.u32 %v2491_v24, %v2031_v23  ;;  %v2017_v43 = vld [vmem:[%s3924_s1 + $0x90] sm:$0xf0] }
  0x1b   : > { %v2287_v28 = vld [vmem:[%s3924_s1 + $0x2a0] sm:$0xf]  ;;  %v2555_v30 = vld [vmem:[%s3924_s1 + $0x2ac] sm:$0xf0]  ;;  %1054 = vmatpush.bf16.msra.mxu1 %v2176_v17  ;;  %v2160_v33 = vor.u32 %v2523_v27, %v2159_v26  ;;  %1112 = vmatpush.bf16.msra.mxu3 %v2052_v25  ;;  %v2020_v50 = vor.u32 %v2485_v42, %v2017_v43  ;;  %v2481_v54 = vld [vmem:[%s3924_s1 + $0x64] sm:$0xf] }
  0x1c   : > { %1083 = vmatpush.bf16.msra.mxu2 %v2304_v21  ;;  %v2288_v34 = vor.u32 %v2555_v30, %v2287_v28  ;;  %v2015_v35 = vld [vmem:[%s3924_s1 + $0x80] sm:$0xf]  ;;  %v2487_v36 = vld [vmem:[%s3924_s1 + $0x8c] sm:$0xf0]  ;;  %v2001_v55 = vld [vmem:[%s3924_s1 + $0x70] sm:$0xf0] }
  0x1d   : > { %v2143_v37 = vld [vmem:[%s3924_s1 + $0x180] sm:$0xf]  ;;  %v2519_v39 = vld [vmem:[%s3924_s1 + $0x18c] sm:$0xf0]  ;;  %v2016_v44 = vor.u32 %v2487_v36, %v2015_v35  ;;  %v2004_v62 = vor.u32 %v2481_v54, %v2001_v55  ;;  %v2477_v2 = vld [vmem:[%s3924_s1 + $0x44] sm:$0xf] }
  0x1e   : > { %v2271_v40 = vld [vmem:[%s3924_s1 + $0x280] sm:$0xf]  ;;  %v2551_v41 = vld [vmem:[%s3924_s1 + $0x28c] sm:$0xf0]  ;;  %1026 = vmatpush.bf16.msra.mxu0 %v2032_v29  ;;  %v2144_v45 = vor.u32 %v2519_v39, %v2143_v37  ;;  %v1985_v3 = vld [vmem:[%s3924_s1 + $0x50] sm:$0xf0] }
  0x1f   : > { %1055 = vmatpush.bf16.msra.mxu1 %v2160_v33  ;;  %v2272_v46 = vor.u32 %v2551_v41, %v2271_v40  ;;  %v1999_v47 = vld [vmem:[%s3924_s1 + $0x60] sm:$0xf]  ;;  %v2483_v48 = vld [vmem:[%s3924_s1 + $0x6c] sm:$0xf0]  ;;  %1113 = vmatpush.bf16.msra.mxu3 %v2036_v38  ;;  %v1988_v13 = vor.u32 %v2477_v2, %v1985_v3  ;;  %v2473_v14 = vld [vmem:[%s3924_s1 + $0x24] sm:$0xf] }
  0x20   : > { %1084 = vmatpush.bf16.msra.mxu2 %v2288_v34  ;;  %v2127_v49 = vld [vmem:[%s3924_s1 + $0x160] sm:$0xf]  ;;  %v2515_v51 = vld [vmem:[%s3924_s1 + $0x16c] sm:$0xf0]  ;;  %v2000_v56 = vor.u32 %v2483_v48, %v1999_v47  ;;  %v1969_v15 = vld [vmem:[%s3924_s1 + $0x30] sm:$0xf0] }
  0x21   : > { %v2255_v52 = vld [vmem:[%s3924_s1 + $0x260] sm:$0xf]  ;;  %v2547_v53 = vld [vmem:[%s3924_s1 + $0x26c] sm:$0xf0]  ;;  %v2128_v57 = vor.u32 %v2515_v51, %v2127_v49  ;;  %v2982_v22 = vld [vmem:[%s3924_s1 + $0x4] sm:$0xf]  ;;  %v1972_v32 = vor.u32 %v2473_v14, %v1969_v15 }
  0x22   : > { %1027 = vmatpush.bf16.msra.mxu0 %v2016_v44  ;;  %v2256_v58 = vor.u32 %v2547_v53, %v2255_v52  ;;  %v1983_v59 = vld [vmem:[%s3924_s1 + $0x40] sm:$0xf]  ;;  %v2479_v60 = vld [vmem:[%s3924_s1 + $0x4c] sm:$0xf0]  ;;  %v2987_v23 = vld [vmem:[%s3924_s1 + $0x10] sm:$0xf0] }
  0x23   : > { %1056 = vmatpush.bf16.msra.mxu1 %v2144_v45  ;;  %v2111_v61 = vld [vmem:[%s3924_s1 + $0x140] sm:$0xf]  ;;  %1114 = vmatpush.bf16.msra.mxu3 %v2020_v50  ;;  %v2511_v63 = vld [vmem:[%s3924_s1 + $0x14c] sm:$0xf0]  ;;  %v1984_v4 = vor.u32 %v2479_v60, %v1983_v59  ;;  %v2993_v25 = vld [vmem:[%s3924_s1 + $0xe8] sm:$0xf]  ;;  %v1956_v41 = vor.u32 %v2982_v22, %v2987_v23 }
  0x24   : > { %1085 = vmatpush.bf16.msra.mxu2 %v2272_v46  ;;  %v2239_v0 = vld [vmem:[%s3924_s1 + $0x240] sm:$0xf]  ;;  %v2543_v1 = vld [vmem:[%s3924_s1 + $0x24c] sm:$0xf0]  ;;  %v2112_v8 = vor.u32 %v2511_v63, %v2111_v61  ;;  %v2998_v26 = vld [vmem:[%s3924_s1 + $0xf4] sm:$0xf0] }
  0x25   : > { %v1967_v5 = vld [vmem:[%s3924_s1 + $0x20] sm:$0xf]  ;;  %v2475_v6 = vld [vmem:[%s3924_s1 + $0x2c] sm:$0xf0]  ;;  %v2240_v9 = vor.u32 %v2543_v1, %v2239_v0  ;;  %v3003_v27 = vld [vmem:[%s3924_s1 + $0x1e8] sm:$0xf]  ;;  %v2072_v45 = vor.u32 %v2998_v26, %v2993_v25 }
  0x26   : > { %1028 = vmatpush.bf16.msra.mxu0 %v2000_v56  ;;  %v2095_v7 = vld [vmem:[%s3924_s1 + $0x120] sm:$0xf]  ;;  %v2507_v10 = vld [vmem:[%s3924_s1 + $0x12c] sm:$0xf0]  ;;  %v1968_v24 = vor.u32 %v2475_v6, %v1967_v5  ;;  %s223_s12 = scalar_select %p222_p10, %s2949_s30, 7  ;;  %vm355_vm2 = vcmask 1042432  }
  0x27   : > { %1057 = vmatpush.bf16.msra.mxu1 %v2128_v57  ;;  %v2223_v11 = vld [vmem:[%s3924_s1 + $0x220] sm:$0xf]  ;;  %v2539_v12 = vld [vmem:[%s3924_s1 + $0x22c] sm:$0xf0]  ;;  %1115 = vmatpush.bf16.msra.mxu3 %v2004_v62  ;;  %v2096_v28 = vor.u32 %v2507_v10, %v2095_v7  ;;  %vm240_vm0 = vsmask.f32 3328 }
  0x28   : > { %1086 = vmatpush.bf16.msra.mxu2 %v2256_v58  ;;  %v2954_v16 = vld [vmem:[%s3924_s1] sm:$0xf]  ;;  %v2471_v17 = vld [vmem:[%s3924_s1 + $0xc] sm:$0xf0]  ;;  %v2224_v29 = vor.u32 %v2539_v12, %v2223_v11  ;;  %vm241_vm1 = vsmask.f32 7440 }
  0x29   : > { %v2962_v18 = vld [vmem:[%s3924_s1 + $0x100] sm:$0xf]  ;;  %v2967_v19 = vld [vmem:[%s3924_s1 + $0x10c] sm:$0xf0]  ;;  %v3009_v30 = vld [vmem:[%s3924_s1 + $0x1f4] sm:$0xf0]  ;;  %v1952_v38 = vor.u32 %v2471_v17, %v2954_v16 }
  0x2a   : > { %v2972_v20 = vld [vmem:[%s3924_s1 + $0x200] sm:$0xf]  ;;  %v2977_v21 = vld [vmem:[%s3924_s1 + $0x20c] sm:$0xf0]  ;;  %1029 = vmatpush.bf16.msra.mxu0 %v1984_v4  ;;  %v3014_v31 = vld [vmem:[%s3924_s1 + $0x2e4] sm:$0xf]  ;;  %v2080_v39 = vor.u32 %v2967_v19, %v2962_v18  ;;  %v2200_v46 = vor.u32 %v3009_v30, %v3003_v27 }
  0x2b   : > { %1058 = vmatpush.bf16.msra.mxu1 %v2112_v8  ;;  %1116 = vmatpush.bf16.msra.mxu3 %v1988_v13  ;;  %v3019_v33 = vld [vmem:[%s3924_s1 + $0x2f0] sm:$0xf0]  ;;  %v3024_v34 = vld [vmem:[%s3924_s1 + $0x1e4] sm:$0xf]  ;;  %s2597_s7 = smul.u32 12, %s223_s12  ;;  %vm356_vm3 = vcmask 1046532   ;;  %v2208_v40 = vor.u32 %v2977_v21, %v2972_v20  ;;  %vm3123_vm5 = vmor %vm240_vm0, %vm241_vm1 }
  0x2c   : > { %1087 = vmatpush.bf16.msra.mxu2 %v2240_v9  ;;  %v3029_v35 = vld [vmem:[%s3924_s1 + $0x1f0] sm:$0xf0]  ;;  %v3034_v36 = vld [vmem:[%s3924_s1 + $0xc8] sm:$0xf]  ;;  %v3039_v37 = vld [vmem:[%s3924_s1 + $0xd4] sm:$0xf0]  ;;  %v2324_v47 = vor.u32 %v3014_v31, %v3019_v33 }
  0x2d   : > { %v3051_v42 = vld [vmem:[%s3924_s1 + $0x1c8] sm:$0xf]  ;;  %v3056_v43 = vld [vmem:[%s3924_s1 + $0x1d4] sm:$0xf0]  ;;  %v3061_v44 = vld [vmem:[%s3924_s1 + $0x2c4] sm:$0xf]  ;;  %s3066_s25 = scalar_lea.vmem %s3923_s0, %s2597_s7  ;;  %v2196_v54 = vor.u32 %v3024_v34, %v3029_v35  ;;  %v2056_v55 = vor.u32 %v3039_v37, %v3034_v36 }
  0x2e   : > { %1030 = vmatpush.bf16.msra.mxu0 %v1968_v24  ;;  %v3077_v48 = vld [vmem:[%s3924_s1 + $0x2d0] sm:$0xf0]  ;;  %v3082_v49 = vld [vmem:[%s3924_s1 + $0x1c4] sm:$0xf]  ;;  %v228_v52 = vld [vmem:[%s3066_s25] sm:$0xf]  ;;  %v2184_v56 = vor.u32 %v3056_v43, %v3051_v42 }
  0x2f   : > { %1059 = vmatpush.bf16.msra.mxu1 %v2096_v28  ;;  %v3087_v50 = vld [vmem:[%s3924_s1 + $0x1d0] sm:$0xf0]  ;;  %1117 = vmatpush.bf16.msra.mxu3 %v1972_v32  ;;  %v3090_v51 = vld [vmem:[%s3066_s25] sm:$0xff]  ;;  %v2308_v57 = vor.u32 %v3061_v44, %v3077_v48  ;;  %v236_v58 = vld [vmem:[%s3066_s25 + $0x8] sm:$0x1]  ;;  %v244_v59 = vshrl.u32 %v228_v52, 16 }
  0x30   : > { %1088 = vmatpush.bf16.msra.mxu2 %v2224_v29  ;;  %v229_v53 = vld [vmem:[%s3066_s25 + $0x4] sm:$0xf]  ;;  %v247_v60 = vshll.u32 %v228_v52, 16  ;;  %v263_v63 = vshll.u32 %v236_v58, 16  ;;  %v339_v0 = vld [vmem:[%s3066_s25] sm:$0xe]  ;;  %v2180_v3 = vor.u32 %v3082_v49, %v3087_v50  ;;  %vm3108_vm4 = vmor %vm355_vm2, %vm356_vm3 }
  0x31   : > { %v253_v61 = vshll.u32 %v229_v53, 16  ;;  %v257_v62 = vshrl.u32 %v229_v53, 16  ;;  %v360_v1 = vrot.slane %v229_v53, 5  ;;  %v363_v2 = vrot.slane %v236_v58, 5  ;;  %v230_v9 = vld [vmem:[%s3066_s25 + $0xc] sm:$0xf] }
  0x32   : > { %1031 = vmatpush.bf16.msra.mxu0 %v1952_v38  ;;  %v246_v4 = vrot.slane %v244_v59, 4  ;;  %v249_v5 = vrot.slane %v247_v60, 5  ;;  %v265_v10 = vrot.slane %v263_v63, 5  ;;  %v1929_v11 = vrot.slane %v339_v0, 9  ;;  %v3114_v13 = vld [vmem:[%s3066_s25 + $0x10] sm:$0xf] }
  0x33   : > { %1060 = vmatpush.bf16.msra.mxu1 %v2080_v39  ;;  %v255_v6 = vrot.slane %v253_v61, 5  ;;  %v259_v7 = vrot.slane %v257_v62, 4  ;;  %1118 = vmatpush.bf16.msra.mxu3 %v1956_v41  ;;  %v362_v12 = vrot.slane %v360_v1, 4  ;;  %v268_v14 = vshrl.u32 %v230_v9, 16  ;;  %v3118_v17 = vld [vmem:[%s3066_s25 + $0x14] sm:$0x1] }
  0x34   : > { %1089 = vmatpush.bf16.msra.mxu2 %v2208_v40  ;;  %v250_v15 = vor.u32 %v249_v5, %v246_v4  ;;  %v271_v18 = vshll.u32 %v230_v9, 16  ;;  %v277_v19 = vshll.u32 %v3114_v13, 16  ;;  %v361_v21 = vsel %vm3108_vm4, %v1929_v11, %v360_v1  ;;  %v340_v25 = vld [vmem:[%s3066_s25 + $0xc] sm:$0xe]  ;;  %v2039_v30 = vld [vmem:[%s3924_s1 + $0xa8] sm:$0xf] }
  0x35   : > { %1032 = vmatmul.bf16.vlgmr.msra.gmra.mxu0 %v3090_v51  ;;  %v260_v16 = vor.u32 %v259_v7, %v255_v6  ;;  %v364_v22 = vsel %vm3108_vm4, %v362_v12, %v363_v2  ;;  %v270_v23 = vrot.slane %v268_v14, 4  ;;  %v281_v24 = vshrl.u32 %v3114_v13, 16  ;;  %v2492_v31 = vld [vmem:[%s3924_s1 + $0xb4] sm:$0xf0]  ;;  %v2167_v36 = vld [vmem:[%s3924_s1 + $0x1a8] sm:$0xf] }
  0x36   : > { %1140 = vmatpush.bf16.msrb.mxu0 %v2196_v54  ;;  %v251_v26 = vrot.slane %v250_v15, 4  ;;  %v422_v28 = vunpack.c.l.b16 %v361_v21  ;;  %v423_v29 = vunpack.c.l.b16 %v364_v22  ;;  %1119 = vmatmul.bf16.vlgmr.msra.gmra.mxu3 %v3090_v51  ;;  %v273_v32 = vrot.slane %v271_v18, 5  ;;  %v2524_v41 = vld [vmem:[%s3924_s1 + $0x1b4] sm:$0xf0]  ;;  %v2553_v42 = vld [vmem:[%s3924_s1 + $0x2a4] sm:$0xf] }
  0x37   : > { %1227 = vmatpush.bf16.msrb.mxu3 %v2200_v46  ;;  %1169 = vmatpush.bf16.msrb.mxu1 %v2324_v47  ;;  %v261_v27 = vrot.slane %v260_v16, 4  ;;  %v3140_v33 = vrot.slane %v277_v19, 5  ;;  %v283_v34 = vrot.slane %v281_v24, 4  ;;  %v287_v35 = vshll.u32 %v3118_v17, 16  ;;  %v2289_v47 = vld [vmem:[%s3924_s1 + $0x2b0] sm:$0xf0] }
  0x38   : > { %1198 = vmatpush.bf16.msrb.mxu2 %v2072_v45  ;;  %v256_v37 = vsel %vm3123_vm5, %v251_v26, %v255_v6  ;;  %v3150_v39 = vpack.c.b16 %v423_v29, %v422_v28  ;;  %v1930_v40 = vrot.slane %v340_v25, 9  ;;  %v274_v46 = vor.u32 %v273_v32, %v270_v23  ;;  %v2521_v49 = vld [vmem:[%s3924_s1 + $0x1a4] sm:$0xf]  ;;  %v2161_v50 = vld [vmem:[%s3924_s1 + $0x1b0] sm:$0xf0]  ;;  %v3219_v19 = vld [vmem:[%s3066_s25 + $0xc] sm:$0xff] }
  0x39   : > { %v266_v38 = vsel %vm3123_vm5, %v261_v27, %v265_v10  ;;  %v406_v43 = vunpack.c.l.b16 %v256_v37  ;;  %v284_v52 = vor.u32 %v283_v34, %v3140_v33  ;;  %v367_v44 = vrot.slane %v3114_v13, 5  ;;  %v2023_v54 = vld [vmem:[%s3924_s1 + $0x88] sm:$0xf]  ;;  %v2520_v59 = vld [vmem:[%s3924_s1 + $0x194] sm:$0xf0]  ;;  %s1926_s7 = sshll.u32 %s218_s23, 2 }
  0x3a   : > { %v407_v45 = vunpack.c.l.b16 %v266_v38  ;;  %1141 = vmatpush.bf16.msrb.mxu0 %v2180_v3  ;;  %1090 = vmatmul.bf16.vlgmr.msra.gmra.mxu2 %v3150_v39  ;;  %v370_v48 = vrot.slane %v3118_v17, 5  ;;  %v2040_v53 = vor.u32 %v2492_v31, %v2039_v30  ;;  %v2151_v58 = vld [vmem:[%s3924_s1 + $0x188] sm:$0xf]  ;;  %v2549_v60 = vld [vmem:[%s3924_s1 + $0x284] sm:$0xf]  ;;  %v275_v61 = vrot.slane %v274_v46, 4 }
  0x3b   : > { %1228 = vmatpush.bf16.msrb.mxu3 %v2184_v56  ;;  %1170 = vmatpush.bf16.msrb.mxu1 %v2308_v57  ;;  %v2168_v57 = vor.u32 %v2524_v41, %v2167_v36  ;;  %v369_v62 = vrot.slane %v367_v44, 4  ;;  %v2292_v63 = vor.u32 %v2553_v42, %v2289_v47  ;;  %v2164_v0 = vor.u32 %v2521_v49, %v2161_v50  ;;  %v2273_v1 = vld [vmem:[%s3924_s1 + $0x290] sm:$0xf0]  ;;  %v2517_v2 = vld [vmem:[%s3924_s1 + $0x184] sm:$0xf]  ;;  %s220_s11 = scalar_lea.vmem [#allocation2], %s1926_s7 }
  0x3c   : > { %1199 = vmatpush.bf16.msrb.mxu2 %v2056_v55  ;;  %v2488_v55 = vld [vmem:[%s3924_s1 + $0x94] sm:$0xf0]  ;;  %v3180_v56 = vpack.c.b16 %v407_v45, %v406_v43  ;;  %v2145_v4 = vld [vmem:[%s3924_s1 + $0x190] sm:$0xf0]  ;;  %v3203_v6 = vld [vmem:[%s3066_s25 + $0x1c] sm:$0xf]  ;;  %v368_v10 = vsel %vm3108_vm4, %v1930_v40, %v367_v44  ;;  %v2152_v11 = vor.u32 %v2520_v59, %v2151_v58  ;;  %v2276_v14 = vor.u32 %v2549_v60, %v2273_v1 }
  0x3d   : > { %v2024_v3 = vor.u32 %v2488_v55, %v2023_v54  ;;  %v232_v5 = vld [vmem:[%s3066_s25 + $0x18] sm:$0xf]  ;;  %v285_v7 = vrot.slane %v284_v52, 4  ;;  %v289_v9 = vrot.slane %v287_v35, 5  ;;  %v2007_v12 = vld [vmem:[%s3924_s1 + $0x68] sm:$0xf]  ;;  %v371_v13 = vsel %vm3108_vm4, %v369_v62, %v370_v48 }
  0x3e   : > { %1061 = vmatmul.bf16.vlgmr.msra.gmra.mxu1 %v3180_v56  ;;  %1142 = vmatpush.bf16.msrb.mxu0 %v2164_v0  ;;  %v2148_v15 = vor.u32 %v2517_v2, %v2145_v4  ;;  %v292_v16 = vshrl.u32 %v232_v5, 16  ;;  %v2484_v17 = vld [vmem:[%s3924_s1 + $0x74] sm:$0xf0]  ;;  %v2135_v18 = vld [vmem:[%s3924_s1 + $0x168] sm:$0xf]  ;;  %v295_v21 = vshll.u32 %v232_v5, 16  ;;  %v280_v25 = vsel %vm3123_vm5, %v275_v61, %v3140_v33 }
  0x3f   : > { %1229 = vmatpush.bf16.msrb.mxu3 %v2168_v57  ;;  %1171 = vmatpush.bf16.msrb.mxu1 %v2292_v63  ;;  %v301_v22 = vshll.u32 %v3203_v6, 16  ;;  %v305_v23 = vshrl.u32 %v3203_v6, 16  ;;  %v2516_v24 = vld [vmem:[%s3924_s1 + $0x174] sm:$0xf0]  ;;  %v290_v26 = vsel %vm3123_vm5, %v285_v7, %v289_v9  ;;  %v424_v27 = vunpack.c.l.b16 %v368_v10  ;;  %v2545_v29 = vld [vmem:[%s3924_s1 + $0x264] sm:$0xf] }
  0x40   : > { %1200 = vmatpush.bf16.msrb.mxu2 %v2040_v53  ;;  %v425_v28 = vunpack.c.l.b16 %v371_v13  ;;  %v2257_v30 = vld [vmem:[%s3924_s1 + $0x270] sm:$0xf0]  ;;  %v238_v31 = vld [vmem:[%s3066_s25 + $0x20] sm:$0x1]  ;;  %v294_v32 = vrot.slane %v292_v16, 4  ;;  %v297_v34 = vrot.slane %v295_v21, 5  ;;  %v2008_v33 = vor.u32 %v2484_v17, %v2007_v12 }
  0x41   : > { %v2136_v35 = vor.u32 %v2516_v24, %v2135_v18  ;;  %v2513_v36 = vld [vmem:[%s3924_s1 + $0x164] sm:$0xf]  ;;  %v2129_v37 = vld [vmem:[%s3924_s1 + $0x170] sm:$0xf0]  ;;  %v408_v38 = vunpack.c.l.b16 %v280_v25  ;;  %v3245_v40 = vrot.slane %v301_v22, 5  ;;  %v307_v41 = vrot.slane %v305_v23, 4 }
  0x42   : > { %1143 = vmatpush.bf16.msrb.mxu0 %v2148_v15  ;;  %v1991_v42 = vld [vmem:[%s3924_s1 + $0x48] sm:$0xf]  ;;  %v2480_v43 = vld [vmem:[%s3924_s1 + $0x54] sm:$0xf0]  ;;  %v409_v45 = vunpack.c.l.b16 %v290_v26  ;;  %v2260_v46 = vor.u32 %v2545_v29, %v2257_v30  ;;  %v2132_v47 = vor.u32 %v2513_v36, %v2129_v37  ;;  %v2541_v44 = vld [vmem:[%s3924_s1 + $0x244] sm:$0xf]  ;;  %v3262_v48 = vpack.c.b16 %v425_v28, %v424_v27 }
  0x43   : > { %1230 = vmatpush.bf16.msrb.mxu3 %v2152_v11  ;;  %1172 = vmatpush.bf16.msrb.mxu1 %v2276_v14  ;;  %v1992_v49 = vor.u32 %v2480_v43, %v1991_v42  ;;  %v2119_v50 = vld [vmem:[%s3924_s1 + $0x148] sm:$0xf]  ;;  %v2512_v52 = vld [vmem:[%s3924_s1 + $0x154] sm:$0xf0]  ;;  %v2241_v54 = vld [vmem:[%s3924_s1 + $0x250] sm:$0xf0]  ;;  %v298_v61 = vor.u32 %v297_v34, %v294_v32  ;;  %v308_v62 = vor.u32 %v307_v41, %v3245_v40 }
  0x44   : > { %1201 = vmatpush.bf16.msrb.mxu2 %v2024_v3  ;;  %v2120_v53 = vor.u32 %v2512_v52, %v2119_v50  ;;  %v2509_v55 = vld [vmem:[%s3924_s1 + $0x144] sm:$0xf]  ;;  %v341_v57 = vld [vmem:[%s3066_s25 + $0x18] sm:$0xe]  ;;  %v374_v58 = vrot.slane %v3203_v6, 5  ;;  %v2244_v59 = vor.u32 %v2541_v44, %v2241_v54  ;;  %v311_v63 = vshll.u32 %v238_v31, 16 }
  0x45   : > { %1037 = vmatmul.bf16.gmra.mxu0 %v3219_v19  ;;  %v2113_v60 = vld [vmem:[%s3924_s1 + $0x150] sm:$0xf0]  ;;  %v3277_v1 = vpack.c.b16 %v409_v45, %v408_v38  ;;  %v1931_v2 = vrot.slane %v341_v57, 9  ;;  %v377_v4 = vrot.slane %v238_v31, 5  ;;  %v299_v5 = vrot.slane %v298_v61, 4  ;;  %v3292_v13 = vld [vmem:[%s3066_s25 + $0x18] sm:$0xff] }
  0x46   : > { %1124 = vmatmul.bf16.gmra.mxu3 %v3219_v19  ;;  %1144 = vmatpush.bf16.msrb.mxu0 %v2132_v47  ;;  %v2116_v0 = vor.u32 %v2509_v55, %v2113_v60  ;;  %v376_v3 = vrot.slane %v374_v58, 4  ;;  %v309_v6 = vrot.slane %v308_v62, 4  ;;  %v313_v7 = vrot.slane %v311_v63, 5  ;;  %v234_v9 = vld [vmem:[%s3066_s25 + $0x24] sm:$0xf]  ;;  %s1860_s12 = sshll.u32 %s220_s11, 4  ;;  %s1861_s12 = int_to_ptr.vmem [resolvable:$true] %s1860_s12 }
  0x47   : > { %1231 = vmatpush.bf16.msrb.mxu3 %v2136_v35  ;;  %1173 = vmatpush.bf16.msrb.mxu1 %v2260_v46  ;;  %v3283_v10 = vld [vmem:[%s3066_s25 + $0x28] sm:$0xf]  ;;  %v2476_v12 = vld [vmem:[%s3924_s1 + $0x34] sm:$0xf0]  ;;  %v375_v14 = vsel %vm3108_vm4, %v1931_v2, %v374_v58  ;;  %v2537_v18 = vld [vmem:[%s3924_s1 + $0x224] sm:$0xf]  ;;  %v304_v37 = vsel %vm3123_vm5, %v299_v5, %v3245_v40 }
  0x48   : > { %1202 = vmatpush.bf16.msrb.mxu2 %v2008_v33  ;;  %v1975_v11 = vld [vmem:[%s3924_s1 + $0x28] sm:$0xf]  ;;  %v2508_v17 = vld [vmem:[%s3924_s1 + $0x134] sm:$0xf0]  ;;  %v378_v21 = vsel %vm3108_vm4, %v376_v3, %v377_v4  ;;  %v316_v22 = vshrl.u32 %v234_v9, 16  ;;  %v319_v23 = vshll.u32 %v234_v9, 16  ;;  %v426_v32 = vunpack.c.l.b16 %v375_v14 }
  0x49   : > { %v1976_v15 = vor.u32 %v2476_v12, %v1975_v11  ;;  %v2103_v16 = vld [vmem:[%s3924_s1 + $0x128] sm:$0xf]  ;;  %v2225_v25 = vld [vmem:[%s3924_s1 + $0x230] sm:$0xf0]  ;;  %v2505_v26 = vld [vmem:[%s3924_s1 + $0x124] sm:$0xf]  ;;  %v314_v38 = vsel %vm3123_vm5, %v309_v6, %v313_v7  ;;  %v427_v41 = vunpack.c.l.b16 %v378_v21  ;;  %v410_v55 = vunpack.c.l.b16 %v304_v37 }
  0x4a   : > { %1095 = vmatmul.bf16.gmra.mxu2 %v3262_v48  ;;  %1145 = vmatpush.bf16.msrb.mxu0 %v2116_v0  ;;  %v2104_v24 = vor.u32 %v2508_v17, %v2103_v16  ;;  %v325_v27 = vshll.u32 %v3283_v10, 16  ;;  %v329_v28 = vshrl.u32 %v3283_v10, 16  ;;  %v2228_v29 = vor.u32 %v2537_v18, %v2225_v25  ;;  %v2097_v30 = vld [vmem:[%s3924_s1 + $0x130] sm:$0xf0]  ;;  %v1959_v31 = vld [vmem:[%s3924_s1 + $0x8] sm:$0xf] }
  0x4b   : > { %1232 = vmatpush.bf16.msrb.mxu3 %v2120_v53  ;;  %1174 = vmatpush.bf16.msrb.mxu1 %v2244_v59  ;;  %v2100_v34 = vor.u32 %v2505_v26, %v2097_v30  ;;  %v2472_v33 = vld [vmem:[%s3924_s1 + $0x14] sm:$0xf0]  ;;  %v2087_v35 = vld [vmem:[%s3924_s1 + $0x108] sm:$0xf]  ;;  %v2533_v43 = vld [vmem:[%s3924_s1 + $0x204] sm:$0xf]  ;;  %v411_v57 = vunpack.c.l.b16 %v314_v38  ;;  %v3351_v59 = vpack.c.b16 %v427_v41, %v426_v32 }
  0x4c   : > { %1203 = vmatpush.bf16.msrb.mxu2 %v1992_v49  ;;  %v2504_v36 = vld [vmem:[%s3924_s1 + $0x114] sm:$0xf0]  ;;  %v1960_v42 = vor.u32 %v2472_v33, %v1959_v31  ;;  %v2209_v45 = vld [vmem:[%s3924_s1 + $0x210] sm:$0xf0]  ;;  %v2501_v46 = vld [vmem:[%s3924_s1 + $0x104] sm:$0xf] }
  0x4d   : > { %v318_v40 = vrot.slane %v316_v22, 4  ;;  %v2088_v47 = vor.u32 %v2504_v36, %v2087_v35  ;;  %v2212_v49 = vor.u32 %v2533_v43, %v2209_v45  ;;  %v2081_v50 = vld [vmem:[%s3924_s1 + $0x110] sm:$0xf0]  ;;  %v321_v52 = vrot.slane %v319_v23, 5  ;;  %v239_v58 = vld [vmem:[%s3066_s25 + $0x2c] sm:$0x1] }
  0x4e   : > { %1066 = vmatmul.bf16.gmra.mxu1 %v3277_v1  ;;  %1146 = vmatpush.bf16.msrb.mxu0 %v2100_v34  ;;  %v3348_v44 = vrot.slane %v325_v27, 5  ;;  %v331_v53 = vrot.slane %v329_v28, 4  ;;  %v2084_v54 = vor.u32 %v2501_v46, %v2081_v50  ;;  %v342_v60 = vld [vmem:[%s3066_s25 + $0x24] sm:$0xe]  ;;  %v381_v61 = vrot.slane %v3283_v10, 5  ;;  %s1848_s30 = scalar_lea.sflag [#allocation3], %s218_s23 }
  0x4f   : > { %1233 = vmatpush.bf16.msrb.mxu3 %v2104_v24  ;;  %1175 = vmatpush.bf16.msrb.mxu1 %v2228_v29  ;;  %v322_v62 = vor.u32 %v321_v52, %v318_v40  ;;  %v335_v0 = vshll.u32 %v239_v58, 16  ;;  %v3357_v2 = vpack.c.b16 %v411_v57, %v410_v55  ;;  %v1932_v3 = vrot.slane %v342_v60, 9  ;;  %v2530_v10 = vld [vmem:[%s3924_s1 + $0x1ec] sm:$0xf]  ;;  %v2201_v11 = vld [vmem:[%s3924_s1 + $0x1f8] sm:$0xf0] }
  0x50   : > { %1204 = vmatpush.bf16.msrb.mxu2 %v1976_v15  ;;  %v332_v63 = vor.u32 %v331_v53, %v3348_v44  ;;  %v383_v4 = vrot.slane %v381_v61, 4  ;;  %v384_v5 = vrot.slane %v239_v58, 5  ;;  %v2562_v12 = vld [vmem:[%s3924_s1 + $0x2ec] sm:$0xf]  ;;  %v3371_v14 = vld [vmem:[%s3066_s25 + $0x24] sm:$0xff]  ;;  %v2204_v16 = vor.u32 %v2530_v10, %v2201_v11  ;;  %s2652_s25 = sshra.s32 %s1863_s13, 4  ;;  %s2653_s25 = int_to_ptr.hbm [resolvable:$true] %s2652_s25 }
  0x51   : > { %v323_v6 = vrot.slane %v322_v62, 4  ;;  %v337_v9 = vrot.slane %v335_v0, 5  ;;  %v382_v15 = vsel %vm3108_vm4, %v1932_v3, %v381_v61  ;;  %v2329_v17 = vld [vmem:[%s3924_s1 + $0x2f8] sm:$0xf0]  ;;  %v2498_v18 = vld [vmem:[%s3924_s1 + $0xec] sm:$0xf]  ;;  %p2659_p0 = scmp.lt.s32.totalorder %s2653_s25, %s3928_s5 }
  0x52   : > { %1147 = vmatpush.bf16.msrb.mxu0 %v2084_v54  ;;  %v333_v7 = vrot.slane %v332_v63, 4  ;;  %v2073_v21 = vld [vmem:[%s3924_s1 + $0xf8] sm:$0xf0]  ;;  %v385_v22 = vsel %vm3108_vm4, %v383_v4, %v384_v5  ;;  %v2332_v23 = vor.u32 %v2562_v12, %v2329_v17  ;;  %v2327_v25 = vld [vmem:[%s3924_s1 + $0x2e8] sm:$0xf]  ;;  %v428_v31 = vunpack.c.l.b16 %v382_v15  ;;  %s2654_s22 = scalar_lea.hbm %s2653_s25, 4 }
  0x53   : > { %1234 = vmatpush.bf16.msrb.mxu3 %v2088_v47  ;;  %1176 = vmatpush.bf16.msrb.mxu1 %v2212_v49  ;;  %v2076_v24 = vor.u32 %v2498_v18, %v2073_v21  ;;  %v2564_v26 = vld [vmem:[%s3924_s1 + $0x2f4] sm:$0xf0]  ;;  %v2526_v27 = vld [vmem:[%s3924_s1 + $0x1cc] sm:$0xf]  ;;  %v2185_v8 = vld [vmem:[%s3924_s1 + $0x1d8] sm:$0xf0]  ;;  %v328_v37 = vsel %vm3123_vm5, %v323_v6, %v3348_v44  ;;  %v429_v41 = vunpack.c.l.b16 %v385_v22  ;;  %p2655_p11 = scmp.ne.s32.totalorder %s2653_s25, %s2654_s22  ;;  %p2660_p1 = scmp.lt.s32.totalorder %s2658_s16, %s2654_s22 }
  0x54   : > { %1205 = vmatpush.bf16.msrb.mxu2 %v1960_v42  ;;  %v2328_v28 = vor.u32 %v2564_v26, %v2327_v25  ;;  %v2558_v29 = vld [vmem:[%s3924_s1 + $0x2cc] sm:$0xf]  ;;  %v2313_v30 = vld [vmem:[%s3924_s1 + $0x2d8] sm:$0xf0]  ;;  %v2188_v32 = vor.u32 %v2526_v27, %v2185_v8  ;;  %v2311_v36 = vld [vmem:[%s3924_s1 + $0x2c8] sm:$0xf]  ;;  %v338_v38 = vsel %vm3123_vm5, %v333_v7, %v337_v9  ;;  %v412_v46 = vunpack.c.l.b16 %v328_v37 }
  0x55   : > { %1042 = vmatmul.bf16.gmra.mxu0 %v3292_v13  ;;  %v2316_v34 = vor.u32 %v2558_v29, %v2313_v30  ;;  %v2494_v33 = vld [vmem:[%s3924_s1 + $0xcc] sm:$0xf]  ;;  %v2057_v35 = vld [vmem:[%s3924_s1 + $0xd8] sm:$0xf0]  ;;  %v2560_v43 = vld [vmem:[%s3924_s1 + $0x2d4] sm:$0xf0]  ;;  %v413_v40 = vunpack.c.l.b16 %v338_v38  ;;  %v3422_v47 = vpack.c.b16 %v429_v41, %v428_v31  ;;  %p2656_p12 = pnand %p2655_p11, %p2769_p5  ;;  %p2661_p2 = por %p2660_p1, %p2659_p0 }
  0x56   : > { %1129 = vmatmul.bf16.gmra.mxu3 %v3292_v13  ;;  %1256 = vmatpush.bf16.msra.mxu0 %v2328_v28  ;;  %v2060_v42 = vor.u32 %v2494_v33, %v2057_v35  ;;  %v2312_v45 = vor.u32 %v2560_v43, %v2311_v36  ;;  %v2522_v49 = vld [vmem:[%s3924_s1 + $0x1ac] sm:$0xf]  ;;  %v2169_v50 = vld [vmem:[%s3924_s1 + $0x1b8] sm:$0xf0]  ;;  %v2295_v60 = vld [vmem:[%s3924_s1 + $0x2a8] sm:$0xf] }
  0x57   : > { %1343 = vmatpush.bf16.msra.mxu3 %v2332_v23  ;;  %1285 = vmatpush.bf16.msra.mxu1 %v2076_v24  ;;  %v3425_v20 = vpack.c.b16 %v413_v40, %v412_v46  ;;  %v2554_v52 = vld [vmem:[%s3924_s1 + $0x2ac] sm:$0xf]  ;;  %v2172_v44 = vor.u32 %v2522_v49, %v2169_v50  ;;  %v2297_v53 = vld [vmem:[%s3924_s1 + $0x2b8] sm:$0xf0]  ;;  %v2556_v61 = vld [vmem:[%s3924_s1 + $0x2b4] sm:$0xf0]  ;;  %p2657_p13 = pneg %p2656_p12 }
  0x58   : > { %1314 = vmatpush.bf16.msra.mxu2 %v2204_v16  ;;  %v2490_v54 = vld [vmem:[%s3924_s1 + $0xac] sm:$0xf]  ;;  %v2041_v55 = vld [vmem:[%s3924_s1 + $0xb8] sm:$0xf0]  ;;  %v2300_v57 = vor.u32 %v2554_v52, %v2297_v53  ;;  %v2296_v63 = vor.u32 %v2556_v61, %v2295_v60  ;;  %v2279_v10 = vld [vmem:[%s3924_s1 + $0x288] sm:$0xf] }
  0x59   : > { %v2044_v58 = vor.u32 %v2490_v54, %v2041_v55  ;;  %v2518_v62 = vld [vmem:[%s3924_s1 + $0x18c] sm:$0xf]  ;;  %v2153_v0 = vld [vmem:[%s3924_s1 + $0x198] sm:$0xf0]  ;;  %v2552_v12 = vld [vmem:[%s3924_s1 + $0x294] sm:$0xf0]  ;;  %p2662_p3 = pnand %p2661_p2, %p2657_p13 }
  0x5a   : > { %1100 = vmatmul.bf16.gmra.mxu2 %v3351_v59  ;;  %1257 = vmatpush.bf16.msra.mxu0 %v2312_v45  ;;  %v2550_v3 = vld [vmem:[%s3924_s1 + $0x28c] sm:$0xf]  ;;  %v2281_v4 = vld [vmem:[%s3924_s1 + $0x298] sm:$0xf0]  ;;  %v2156_v5 = vor.u32 %v2518_v62, %v2153_v0  ;;  %v2280_v15 = vor.u32 %v2552_v12, %v2279_v10  ;;  %v2263_v27 = vld [vmem:[%s3924_s1 + $0x268] sm:$0xf] }
  0x5b   : > { %1344 = vmatpush.bf16.msra.mxu3 %v2316_v34  ;;  %1286 = vmatpush.bf16.msra.mxu1 %v2060_v42  ;;  %v2284_v6 = vor.u32 %v2550_v3, %v2281_v4  ;;  %v2486_v7 = vld [vmem:[%s3924_s1 + $0x8c] sm:$0xf]  ;;  %v2025_v9 = vld [vmem:[%s3924_s1 + $0x98] sm:$0xf0]  ;;  %v2548_v28 = vld [vmem:[%s3924_s1 + $0x274] sm:$0xf0] }
  0x5c   : > { %1315 = vmatpush.bf16.msra.mxu2 %v2188_v32  ;;  %v2028_v11 = vor.u32 %v2486_v7, %v2025_v9  ;;  %v2514_v16 = vld [vmem:[%s3924_s1 + $0x16c] sm:$0xf]  ;;  %v2137_v17 = vld [vmem:[%s3924_s1 + $0x178] sm:$0xf0]  ;;  %v2264_v29 = vor.u32 %v2548_v28, %v2263_v27  ;;  %v2247_v37 = vld [vmem:[%s3924_s1 + $0x248] sm:$0xf] }
  0x5d   : > { %v2546_v18 = vld [vmem:[%s3924_s1 + $0x26c] sm:$0xf]  ;;  %v2140_v21 = vor.u32 %v2514_v16, %v2137_v17  ;;  %v2265_v22 = vld [vmem:[%s3924_s1 + $0x278] sm:$0xf0]  ;;  %v2544_v41 = vld [vmem:[%s3924_s1 + $0x254] sm:$0xf0] }
  0x5e   : > { %1071 = vmatmul.bf16.gmra.mxu1 %v3357_v2  ;;  %1258 = vmatpush.bf16.msra.mxu0 %v2296_v63  ;;  %v2482_v23 = vld [vmem:[%s3924_s1 + $0x6c] sm:$0xf]  ;;  %v2009_v24 = vld [vmem:[%s3924_s1 + $0x78] sm:$0xf0]  ;;  %v2268_v25 = vor.u32 %v2546_v18, %v2265_v22  ;;  %v2248_v42 = vor.u32 %v2544_v41, %v2247_v37  ;;  %v2231_v54 = vld [vmem:[%s3924_s1 + $0x228] sm:$0xf] }
  0x5f   : > { %1345 = vmatpush.bf16.msra.mxu3 %v2300_v57  ;;  %1287 = vmatpush.bf16.msra.mxu1 %v2044_v58  ;;  %v2012_v26 = vor.u32 %v2482_v23, %v2009_v24  ;;  %v2510_v8 = vld [vmem:[%s3924_s1 + $0x14c] sm:$0xf]  ;;  %v2121_v30 = vld [vmem:[%s3924_s1 + $0x158] sm:$0xf0]  ;;  %v2540_v55 = vld [vmem:[%s3924_s1 + $0x234] sm:$0xf0] }
  0x60   : > { %1316 = vmatpush.bf16.msra.mxu2 %v2172_v44  ;;  %v2542_v31 = vld [vmem:[%s3924_s1 + $0x24c] sm:$0xf]  ;;  %v2249_v32 = vld [vmem:[%s3924_s1 + $0x258] sm:$0xf0]  ;;  %v2124_v34 = vor.u32 %v2510_v8, %v2121_v30  ;;  %v2232_v58 = vor.u32 %v2540_v55, %v2231_v54  ;;  %v2536_v7 = vld [vmem:[%s3924_s1 + $0x214] sm:$0xf0] }
  0x61   : > { %v2252_v33 = vor.u32 %v2542_v31, %v2249_v32  ;;  %v2478_v35 = vld [vmem:[%s3924_s1 + $0x4c] sm:$0xf]  ;;  %v1993_v36 = vld [vmem:[%s3924_s1 + $0x58] sm:$0xf0]  ;;  %v2569_v23 = vld [vmem:[%s3926_s3 + $0x20] sm:$0xff]  ;;  %vm1837_vm6 = vcmask 1041409  }
  0x62   : > { %1259 = vmatpush.bf16.msra.mxu0 %v2280_v15  ;;  %v1996_v38 = vor.u32 %v2478_v35, %v1993_v36  ;;  %v2506_v43 = vld [vmem:[%s3924_s1 + $0x12c] sm:$0xf]  ;;  %v2105_v45 = vld [vmem:[%s3924_s1 + $0x138] sm:$0xf0]  ;;  %v2579_v8 = vld [vmem:[%s3926_s3 + $0x70] sm:$0xff]  ;;  %vm1840_vm7 = vcmask 1042434  }
  0x63   : > { %1346 = vmatpush.bf16.msra.mxu3 %v2284_v6  ;;  %1288 = vmatpush.bf16.msra.mxu1 %v2028_v11  ;;  %v2538_v46 = vld [vmem:[%s3924_s1 + $0x22c] sm:$0xf]  ;;  %v2108_v40 = vor.u32 %v2506_v43, %v2105_v45  ;;  %v2233_v49 = vld [vmem:[%s3924_s1 + $0x238] sm:$0xf0]  ;;  %v2215_v6 = vld [vmem:[%s3924_s1 + $0x208] sm:$0xf] }
  0x64   : > { %1317 = vmatpush.bf16.msra.mxu2 %v2156_v5  ;;  %v2474_v50 = vld [vmem:[%s3924_s1 + $0x2c] sm:$0xf]  ;;  %v1977_v52 = vld [vmem:[%s3924_s1 + $0x38] sm:$0xf0]  ;;  %v2236_v44 = vor.u32 %v2538_v46, %v2233_v49  ;;  %v2216_v9 = vor.u32 %v2536_v7, %v2215_v6  ;;  %v2565_v35 = vld [vmem:[%s3926_s3] sm:$0xff]  ;;  %vm1843_vm8 = vcmask 1043459  }
  0x65   : > { %1047 = vmatmul.bf16.gmra.mxu0 %v3371_v14  ;;  %v1980_v53 = vor.u32 %v2474_v50, %v1977_v52  ;;  %v2502_v57 = vld [vmem:[%s3924_s1 + $0x10c] sm:$0xf]  ;;  %v2089_v60 = vld [vmem:[%s3924_s1 + $0x118] sm:$0xf0]  ;;  %v3678_v41 = vld [vmem:[%s3925_s2] sm:$0xf] }
  0x66   : > { %1134 = vmatmul.bf16.gmra.mxu3 %v3371_v14  ;;  %1260 = vmatpush.bf16.msra.mxu0 %v2264_v29  ;;  %v2534_v61 = vld [vmem:[%s3924_s1 + $0x20c] sm:$0xf]  ;;  %v2217_v62 = vld [vmem:[%s3924_s1 + $0x218] sm:$0xf0]  ;;  %v2092_v63 = vor.u32 %v2502_v57, %v2089_v60  ;;  %v2575_v43 = vld [vmem:[%s3926_s3 + $0x50] sm:$0xff] }
  0x67   : > { %1347 = vmatpush.bf16.msra.mxu3 %v2268_v25  ;;  %1289 = vmatpush.bf16.msra.mxu1 %v2012_v26  ;;  %v2220_v0 = vor.u32 %v2534_v61, %v2217_v62  ;;  %v2470_v3 = vld [vmem:[%s3924_s1 + $0xc] sm:$0xf]  ;;  %v1961_v4 = vld [vmem:[%s3924_s1 + $0x18] sm:$0xf0] }
  0x68   : > { %1318 = vmatpush.bf16.msra.mxu2 %v2140_v21  ;;  %v1964_v5 = vor.u32 %v2470_v3, %v1961_v4  ;;  %v2572_v16 = vld [vmem:[%s3926_s3 + $0x38] sm:$0xff]  ;;  %v2566_v32 = vld [vmem:[%s3926_s3 + $0x8] sm:$0xff] }
  0x69   : > { %v2580_v27 = vld [vmem:[%s3926_s3 + $0x78] sm:$0xff] }
  0x6a   : > { %1105 = vmatmul.bf16.gmra.mxu2 %v3422_v47  ;;  %1261 = vmatpush.bf16.msra.mxu0 %v2248_v42  ;;  %v2588_v62 = vld [vmem:[%s3926_s3 + $0xb8] sm:$0xff] }
  0x6b   : > { %1348 = vmatpush.bf16.msra.mxu3 %v2252_v33  ;;  %1290 = vmatpush.bf16.msra.mxu1 %v1996_v38  ;;  %v2577_v33 = vld [vmem:[%s3926_s3 + $0x60] sm:$0xff]  ;;  %v2596_v3 = vld [vmem:[%s3926_s3 + $0xf8] sm:$0xff] }
  0x6c   : > { %1319 = vmatpush.bf16.msra.mxu2 %v2124_v34 }
  0x6e   : > { %1076 = vmatmul.bf16.gmra.mxu1 %v3425_v20  ;;  %1262 = vmatpush.bf16.msra.mxu0 %v2232_v58 }
  0x6f   : > { %1349 = vmatpush.bf16.msra.mxu3 %v2236_v44  ;;  %1291 = vmatpush.bf16.msra.mxu1 %v1980_v53  ;;  %v2573_v44 = vld [vmem:[%s3926_s3 + $0x40] sm:$0xff] }
  0x70   : > { %1320 = vmatpush.bf16.msra.mxu2 %v2108_v40 }
  0x72   : > { %1263 = vmatpush.bf16.msra.mxu0 %v2216_v9 }
  0x73   : > { %1350 = vmatpush.bf16.msra.mxu3 %v2220_v0  ;;  %1292 = vmatpush.bf16.msra.mxu1 %v1964_v5 }
  0x74   : > { %1321 = vmatpush.bf16.msra.mxu2 %v2092_v63 }
  0x75   : > { %1148 = vmatmul.bf16.vlgmr.msrb.gmra.mxu0 %v3180_v56 }
  0x76   : > { %1235 = vmatmul.bf16.vlgmr.msrb.gmra.mxu3 %v3180_v56  ;;  %1676 = vmatpush.bf16.msrb.mxu0 %v2572_v16 }
  0x77   : > { %1763 = vmatpush.bf16.msrb.mxu3 %v2596_v3 }
  0x7a   : > { %1206 = vmatmul.bf16.vlgmr.msrb.gmra.mxu2 %v3090_v51 }
  0x7b   : > { %1734 = vmatpush.bf16.msrb.mxu2 %v2588_v62 }
  0x7e   : > { %1177 = vmatmul.bf16.vlgmr.msrb.gmra.mxu1 %v3150_v39 }
  0x7f   : > { %1705 = vmatpush.bf16.msrb.mxu1 %v2580_v27 }
  0x83   : > { %1706 = vmatpush.bf16.msrb.mxu1 %v2579_v8 }
  0x85   : > { %1153 = vmatmul.bf16.gmra.mxu0 %v3277_v1 }
  0x86   : > { %1240 = vmatmul.bf16.gmra.mxu3 %v3277_v1 }
  0x8a   : > { %1211 = vmatmul.bf16.gmra.mxu2 %v3219_v19 }
  0x8e   : > { %1182 = vmatmul.bf16.gmra.mxu1 %v3262_v48 }
  0x95   : > { %1158 = vmatmul.bf16.gmra.mxu0 %v3357_v2 }
  0x96   : > { %1245 = vmatmul.bf16.gmra.mxu3 %v3357_v2 }
  0x9a   : > { %1216 = vmatmul.bf16.gmra.mxu2 %v3292_v13 }
  0x9e   : > { %1187 = vmatmul.bf16.gmra.mxu1 %v3351_v59 }
  0xa5   : > { %1163 = vmatmul.bf16.gmra.mxu0 %v3425_v20 }
  0xa6   : > { %1250 = vmatmul.bf16.gmra.mxu3 %v3425_v20 }
  0xaa   : > { %1221 = vmatmul.bf16.gmra.mxu2 %v3371_v14 }
  0xae   : > { %1192 = vmatmul.bf16.gmra.mxu1 %v3422_v47 }
  0xb2   : > { %v3589_v10 = vpop.f32.mrf.mxu0 }
  0xb5   : > { %1264 = vmatmul.bf16.vlgmr.msra.gmra.mxu0 %v3150_v39 }
  0xb6   : > { %1351 = vmatmul.bf16.vlgmr.msra.gmra.mxu3 %v3150_v39  ;;  %v2571_v39 = vld [vmem:[%s3926_s3 + $0x30] sm:$0xff] }
  0xb7   : > { %1677 = vmatpush.bf16.msrb.mxu0 %v2571_v39 }
  0xb9   : > { %v3593_v11 = vpop.f32.mrf.mxu3 }
  0xba   : > { %v3595_v12 = vpop.f32.mrf.mxu0  ;;  %1322 = vmatmul.bf16.vlgmr.msra.gmra.mxu2 %v3180_v56  ;;  %v2570_v56 = vld [vmem:[%s3926_s3 + $0x28] sm:$0xff] }
  0xbb   : > { %v3597_v15 = vpop.f32.mrf.mxu1  ;;  %1678 = vmatpush.bf16.msrb.mxu0 %v2570_v56 }
  0xbd   : > { %v3604_v17 = vpop.f32.mrf.mxu2 }
  0xbe   : > { %1293 = vmatmul.bf16.vlgmr.msra.gmra.mxu1 %v3090_v51 }
  0xbf   : > { %1679 = vmatpush.bf16.msrb.mxu0 %v2569_v23 }
  0xc1   : > { %v3609_v18 = vpop.f32.mrf.mxu3 }
  0xc2   : > { %v3611_v21 = vpop.f32.mrf.mxu0 }
  0xc3   : > { %v1064_v22 = vpop.f32.mrf.mxu1 }
  0xc5   : > { %1269 = vmatmul.bf16.gmra.mxu0 %v3262_v48  ;;  %v1093_v51 = vpop.f32.mrf.mxu2 }
  0xc6   : > { %1356 = vmatmul.bf16.gmra.mxu3 %v3262_v48  ;;  %v2568_v48 = vld [vmem:[%s3926_s3 + $0x18] sm:$0xff] }
  0xc7   : > { %1680 = vmatpush.bf16.msrb.mxu0 %v2568_v48  ;;  %v2586_v48 = vld [vmem:[%s3926_s3 + $0xa8] sm:$0xff] }
  0xc9   : > { %v3621_v24 = vpop.f32.mrf.mxu3 }
  0xca   : > { %v3623_v25 = vpop.f32.mrf.mxu0  ;;  %1327 = vmatmul.bf16.gmra.mxu2 %v3277_v1  ;;  %v2567_v1 = vld [vmem:[%s3926_s3 + $0x10] sm:$0xff] }
  0xcb   : > { %v3625_v26 = vpop.f32.mrf.mxu1  ;;  %1681 = vmatpush.bf16.msrb.mxu0 %v2567_v1 }
  0xcd   : > { %v3635_v28 = vpop.f32.mrf.mxu2 }
  0xce   : > { %1298 = vmatmul.bf16.gmra.mxu1 %v3219_v19  ;;  %v2578_v19 = vld [vmem:[%s3926_s3 + $0x68] sm:$0xff] }
  0xcf   : > { %1707 = vmatpush.bf16.msrb.mxu1 %v2578_v19  ;;  %1682 = vmatpush.bf16.msrb.mxu0 %v2566_v32 }
  0xd1   : > { %v3643_v29 = vpop.f32.mrf.mxu3 }
  0xd2   : > { %v3645_v30 = vpop.f32.mrf.mxu0 }
  0xd3   : > { %v3647_v31 = vpop.f32.mrf.mxu1  ;;  %1708 = vmatpush.bf16.msrb.mxu1 %v2577_v33  ;;  %1683 = vmatpush.bf16.msrb.mxu0 %v2565_v35 }
  0xd5   : > { %1274 = vmatmul.bf16.gmra.mxu0 %v3351_v59  ;;  %v3656_v34 = vpop.f32.mrf.mxu2 }
  0xd6   : > { %1361 = vmatmul.bf16.gmra.mxu3 %v3351_v59  ;;  %v2576_v59 = vld [vmem:[%s3926_s3 + $0x58] sm:$0xff] }
  0xd7   : > { %1709 = vmatpush.bf16.msrb.mxu1 %v2576_v59 }
  0xd9   : > { %v3665_v36 = vpop.f32.mrf.mxu3 }
  0xda   : > { %v3667_v37 = vpop.f32.mrf.mxu0  ;;  %1332 = vmatmul.bf16.gmra.mxu2 %v3357_v2  ;;  %v3687_v2 = vperm.slane %v3678_v41, 0 }
  0xdb   : > { %v3669_v38 = vpop.f32.mrf.mxu1  ;;  %1710 = vmatpush.bf16.msrb.mxu1 %v2575_v43 }
  0xdc   : > { %v1034_v49 = vadd.f32 %v3589_v10, %v3687_v2  ;;  %v1036_v50 = vadd.f32 %v3595_v12, %v3687_v2  ;;  %v1041_v7 = vadd.f32 %v3623_v25, %v3687_v2  ;;  %v3738_v10 = vperm.slane %v3678_v41, 1  ;;  %v2587_v12 = vld [vmem:[%s3926_s3 + $0xb0] sm:$0xff] }
  0xdd   : > { %v3681_v42 = vpop.f32.mrf.mxu2  ;;  %1735 = vmatpush.bf16.msrb.mxu2 %v2587_v12  ;;  %v1044_v35 = vadd.f32 %v3645_v30, %v3687_v2  ;;  %v1046_v59 = vadd.f32 %v3667_v37, %v3687_v2  ;;  %v2593_v30 = vld [vmem:[%s3926_s3 + $0xe0] sm:$0xff] }
  0xde   : > { %1303 = vmatmul.bf16.gmra.mxu1 %v3292_v13  ;;  %v2574_v13 = vld [vmem:[%s3926_s3 + $0x48] sm:$0xff]  ;;  %v1063_v53 = vadd.f32 %v3597_v15, %v1034_v49  ;;  %v1065_v54 = vadd.f32 %v1064_v22, %v1036_v50  ;;  %v1070_v16 = vadd.f32 %v3647_v31, %v1041_v7  ;;  %v1123_v25 = vadd.f32 %v3609_v18, %v3738_v10 }
  0xdf   : > { %1711 = vmatpush.bf16.msrb.mxu1 %v2574_v13 }
  0xe0   : > { %v1094_v58 = vadd.f32 %v1093_v51, %v1065_v54  ;;  %v1092_v61 = vadd.f32 %v3604_v17, %v1063_v53  ;;  %v2595_v17 = vld [vmem:[%s3926_s3 + $0xf0] sm:$0xff]  ;;  %v1099_v22 = vadd.f32 %v3656_v34, %v1070_v16  ;;  %v1121_v51 = vadd.f32 %v3593_v11, %v3738_v10  ;;  %v2594_v11 = vld [vmem:[%s3926_s3 + $0xe8] sm:$0xff] }
  0xe1   : > { %v3689_v45 = vpop.f32.mrf.mxu3  ;;  %1764 = vmatpush.bf16.msrb.mxu3 %v2595_v17  ;;  %1736 = vmatpush.bf16.msrb.mxu2 %v2586_v48  ;;  %v1073_v53 = vadd.f32 %v3669_v38, %v1044_v35 }
  0xe2   : > { %v3691_v46 = vpop.f32.mrf.mxu0  ;;  %v1376_v63 = vmax.f32 %v1094_v58, 0.0  ;;  %v1372_v0 = vmax.f32 %v1092_v61, 0.0  ;;  %v1384_v8 = vmax.f32 %v1099_v22, 0.0 }
  0xe3   : > { %v3693_v40 = vpop.f32.mrf.mxu1  ;;  %1712 = vmatpush.bf16.msrb.mxu1 %v2573_v44  ;;  %v2585_v44 = vld [vmem:[%s3926_s3 + $0xa0] sm:$0xff]  ;;  %v1102_v38 = vadd.f32 %v3681_v42, %v1073_v53  ;;  %v1049_v17 = vadd.f32 %v3691_v46, %v3687_v2  ;;  %v2591_v46 = vld [vmem:[%s3926_s3 + $0xd0] sm:$0xff] }
  0xe4   : > { %v1404_v5 = vpack.c.bf16 %v1376_v63, %v1372_v0  ;;  %v1075_v54 = vadd.f32 %v3693_v40, %v1046_v59  ;;  %v1126_v63 = vadd.f32 %v3621_v24, %v3738_v10  ;;  %v1128_v40 = vadd.f32 %v3643_v29, %v3738_v10  ;;  %v2592_v24 = vld [vmem:[%s3926_s3 + $0xd8] sm:$0xff] }
  0xe5   : > { %1279 = vmatmul.bf16.gmra.mxu0 %v3422_v47  ;;  %v3703_v52 = vpop.f32.mrf.mxu2  ;;  %1765 = vmatpush.bf16.msrb.mxu3 %v2594_v11  ;;  %v1133_v11 = vadd.f32 %v3689_v45, %v3738_v10  ;;  %v2581_v45 = vld [vmem:[%s3926_s3 + $0x80] sm:$0xff] }
  0xe6   : > { %1366 = vmatmul.bf16.gmra.mxu3 %v3422_v47  ;;  %1737 = vmatpush.bf16.msrb.mxu2 %v2585_v44  ;;  %v1104_v61 = vadd.f32 %v3703_v52, %v1075_v54  ;;  %v1388_v52 = vmax.f32 %v1102_v38, 0.0 }
  0xe9   : > { %v3710_v55 = vpop.f32.mrf.mxu3  ;;  %1766 = vmatpush.bf16.msrb.mxu3 %v2593_v30 }
  0xea   : > { %v3712_v57 = vpop.f32.mrf.mxu0  ;;  %1337 = vmatmul.bf16.gmra.mxu2 %v3425_v20 }
  0xeb   : > { %v3714_v60 = vpop.f32.mrf.mxu1 }
  0xed   : > { %v3719_v47 = vpop.f32.mrf.mxu2  ;;  %1767 = vmatpush.bf16.msrb.mxu3 %v2592_v24 }
  0xee   : > { %1308 = vmatmul.bf16.gmra.mxu1 %v3371_v14  ;;  %v1039_v14 = vadd.f32 %v3611_v21, %v3687_v2 }
  0xf0   : > { %v1068_v15 = vadd.f32 %v3625_v26, %v1039_v14 }
  0xf1   : > { %v3727_v4 = vpop.f32.mrf.mxu3  ;;  %1768 = vmatpush.bf16.msrb.mxu3 %v2591_v46 }
  0xf2   : > { %v1149_v20 = vpop.f32.mrf.mxu0  ;;  %v1097_v23 = vadd.f32 %v3635_v28, %v1068_v15  ;;  %v1138_v38 = vadd.f32 %v3727_v4, %v3738_v10 }
  0xf3   : > { %v3729_v6 = vpop.f32.mrf.mxu1  ;;  %v1150_v26 = vadd.f32 %v1149_v20, %v1121_v51  ;;  %v2584_v20 = vld [vmem:[%s3926_s3 + $0x98] sm:$0xff] }
  0xf4   : > { %v1380_v31 = vmax.f32 %v1097_v23, 0.0  ;;  %1738 = vmatpush.bf16.msrb.mxu2 %v2584_v20  ;;  %v3847_v20 = vperm.slane %v3678_v41, 2 }
  0xf5   : > { %1684 = vmatmul.bf16.vlgmr.msrb.gmra.mxu0 %v1404_v5  ;;  %v3735_v9 = vpop.f32.mrf.mxu2  ;;  %v1392_v5 = vmax.f32 %v1104_v61, 0.0 }
  0xf6   : > { %v1408_v34 = vpack.c.bf16 %v1384_v8, %v1380_v31  ;;  %v1131_v31 = vadd.f32 %v3665_v36, %v3738_v10 }
  0xf7   : > { %v1412_v15 = vpack.c.bf16 %v1392_v5, %v1388_v52 }
  0xf9   : > { %v3748_v39 = vpop.f32.mrf.mxu3 }
  0xfa   : > { %v1151_v21 = vpop.f32.mrf.mxu0 }
  0xfb   : > { %v1178_v56 = vpop.f32.mrf.mxu1  ;;  %v1152_v1 = vadd.f32 %v1151_v21, %v1123_v25  ;;  %v1051_v21 = vadd.f32 %v3712_v57, %v3687_v2  ;;  %v2583_v25 = vld [vmem:[%s3926_s3 + $0x90] sm:$0xff] }
  0xfc   : > { %v1179_v19 = vadd.f32 %v1178_v56, %v1150_v26  ;;  %v1078_v26 = vadd.f32 %v3714_v60, %v1049_v17  ;;  %1739 = vmatpush.bf16.msrb.mxu2 %v2583_v25  ;;  %v2582_v60 = vld [vmem:[%s3926_s3 + $0x88] sm:$0xff] }
  0xfd   : > { %v3756_v27 = vpop.f32.mrf.mxu2  ;;  %v1080_v48 = vadd.f32 %v3729_v6, %v1051_v21 }
  0xfe   : > { %v1373_v43 = vmax.f32 %v1179_v19, 0.0  ;;  %v1107_v6 = vadd.f32 %v3719_v47, %v1078_v26  ;;  %v2590_v47 = vld [vmem:[%s3926_s3 + $0xc8] sm:$0xff] }
  0xff   : > { %v1109_v8 = vadd.f32 %v3735_v9, %v1080_v48  ;;  %1769 = vmatpush.bf16.msrb.mxu3 %v2590_v47 }
 0x100   : > { %1740 = vmatpush.bf16.msrb.mxu2 %v2582_v60 }
 0x101   : > { %v3764_v28 = vpop.f32.mrf.mxu3 }
 0x102   : > { %v1154_v32 = vpop.f32.mrf.mxu0 }
 0x103   : > { %v1180_v18 = vpop.f32.mrf.mxu1  ;;  %v1155_v0 = vadd.f32 %v1154_v32, %v1126_v63  ;;  %v2589_v63 = vld [vmem:[%s3926_s3 + $0xc0] sm:$0xff] }
 0x104   : > { %v1181_v33 = vadd.f32 %v1180_v18, %v1152_v1  ;;  %v1400_v18 = vmax.f32 %v1109_v8, 0.0  ;;  %1741 = vmatpush.bf16.msrb.mxu2 %v2581_v45  ;;  %1770 = vmatpush.bf16.msrb.mxu3 %v2589_v63 }
 0x105   : > { %1689 = vmatmul.bf16.gmra.mxu0 %v1408_v34  ;;  %v3770_v49 = vpop.f32.mrf.mxu2  ;;  %v1396_v34 = vmax.f32 %v1107_v6, 0.0 }
 0x106   : > { %v1377_v13 = vmax.f32 %v1181_v33, 0.0  ;;  %v1210_v4 = vadd.f32 %v3770_v49, %v3847_v20 }
 0x108   : > { %v1405_v50 = vpack.c.bf16 %v1377_v13, %v1373_v43  ;;  %v1416_v43 = vpack.c.bf16 %v1400_v18, %v1396_v34  ;;  %v1239_v21 = vadd.f32 %v3764_v28, %v1210_v4 }
 0x109   : > { %v3780_v37 = vpop.f32.mrf.mxu3 }
 0x10a   : > { %1713 = vmatmul.bf16.vlgmr.msrb.gmra.mxu1 %v1405_v50  ;;  %v1156_v58 = vpop.f32.mrf.mxu0 }
 0x10b   : > { %v1183_v62 = vpop.f32.mrf.mxu1  ;;  %v1157_v14 = vadd.f32 %v1156_v58, %v1128_v40 }
 0x10c   : > { %v1184_v7 = vadd.f32 %v1183_v62, %v1155_v0  ;;  %v1136_v62 = vadd.f32 %v3710_v55, %v3738_v10  ;;  %v1208_v55 = vadd.f32 %v3756_v27, %v3847_v20  ;;  %v3860_v27 = vperm.slane %v3678_v41, 3 }
 0x10d   : > { %v3788_v3 = vpop.f32.mrf.mxu2 }
 0x10e   : > { %v1381_v22 = vmax.f32 %v1184_v7, 0.0  ;;  %v1213_v28 = vadd.f32 %v3788_v3, %v3847_v20 }
 0x111   : > { %v3796_v42 = vpop.f32.mrf.mxu3 }
 0x112   : > { %v1159_v12 = vpop.f32.mrf.mxu0 }
 0x113   : > { %v1185_v29 = vpop.f32.mrf.mxu1  ;;  %v1160_v19 = vadd.f32 %v1159_v12, %v1131_v31 }
 0x114   : > { %v1186_v16 = vadd.f32 %v1185_v29, %v1157_v14 }
 0x115   : > { %1694 = vmatmul.bf16.gmra.mxu0 %v1412_v15  ;;  %v3802_v51 = vpop.f32.mrf.mxu2 }
 0x116   : > { %v1385_v56 = vmax.f32 %v1186_v16, 0.0  ;;  %v1237_v16 = vadd.f32 %v3748_v39, %v1208_v55  ;;  %v1215_v41 = vadd.f32 %v3802_v51, %v3847_v20 }
 0x118   : > { %v1409_v23 = vpack.c.bf16 %v1385_v56, %v1381_v22  ;;  %v1244_v34 = vadd.f32 %v3796_v42, %v1215_v41 }
 0x119   : > { %v3812_v2 = vpop.f32.mrf.mxu3 }
 0x11a   : > { %1718 = vmatmul.bf16.gmra.mxu1 %v1409_v23  ;;  %v1161_v57 = vpop.f32.mrf.mxu0 }
 0x11b   : > { %v1188_v1 = vpop.f32.mrf.mxu1  ;;  %v1162_v9 = vadd.f32 %v1161_v57, %v1133_v11 }
 0x11c   : > { %v1189_v33 = vadd.f32 %v1188_v1, %v1160_v19  ;;  %v1242_v19 = vadd.f32 %v3780_v37, %v1213_v28 }
 0x11d   : > { %v3823_v32 = vpop.f32.mrf.mxu2 }
 0x11e   : > { %v1389_v50 = vmax.f32 %v1189_v33, 0.0  ;;  %v1218_v42 = vadd.f32 %v3823_v32, %v3847_v20 }
 0x121   : > { %v3825_v35 = vpop.f32.mrf.mxu3 }
 0x122   : > { %v1164_v36 = vpop.f32.mrf.mxu0 }
 0x123   : > { %v1190_v59 = vpop.f32.mrf.mxu1  ;;  %v1165_v40 = vadd.f32 %v1164_v36, %v1136_v62 }
 0x124   : > { %v1191_v13 = vadd.f32 %v1190_v59, %v1162_v9 }
 0x125   : > { %1699 = vmatmul.bf16.gmra.mxu0 %v1416_v43  ;;  %v3833_v53 = vpop.f32.mrf.mxu2 }
 0x126   : > { %v1393_v44 = vmax.f32 %v1191_v13, 0.0 }
 0x128   : > { %v1413_v54 = vpack.c.bf16 %v1393_v44, %v1389_v50 }
 0x129   : > { %v3835_v30 = vpop.f32.mrf.mxu3 }
 0x12a   : > { %1723 = vmatmul.bf16.gmra.mxu1 %v1413_v54  ;;  %v1166_v58 = vpop.f32.mrf.mxu0 }
 0x12b   : > { %v1193_v61 = vpop.f32.mrf.mxu1  ;;  %v1167_v5 = vadd.f32 %v1166_v58, %v1138_v38 }
 0x12c   : > { %v1194_v14 = vadd.f32 %v1193_v61, %v1165_v40  ;;  %v1220_v40 = vadd.f32 %v3833_v53, %v3847_v20 }
 0x12d   : > { %v3844_v0 = vpop.f32.mrf.mxu2 }
 0x12e   : > { %v1397_v10 = vmax.f32 %v1194_v14, 0.0 }
 0x131   : > { %v3849_v52 = vpop.f32.mrf.mxu3 }
 0x132   : > { %v1265_v24 = vpop.f32.mrf.mxu0 }
 0x133   : > { %v1195_v7 = vpop.f32.mrf.mxu1  ;;  %v1266_v22 = vadd.f32 %v1265_v24, %v1237_v16  ;;  %v1247_v24 = vadd.f32 %v3812_v2, %v1218_v42 }
 0x134   : > { %v1196_v12 = vadd.f32 %v1195_v7, %v1167_v5 }
 0x135   : > { %v3855_v15 = vpop.f32.mrf.mxu2  ;;  %v1374_v48 = vmax.f32 %v1266_v22, 0.0 }
 0x136   : > { %v1401_v29 = vmax.f32 %v1196_v12, 0.0  ;;  %v1249_v12 = vadd.f32 %v3825_v35, %v1220_v40  ;;  %v1223_v35 = vadd.f32 %v3844_v0, %v3847_v20 }
 0x138   : > { %v1417_v17 = vpack.c.bf16 %v1401_v29, %v1397_v10  ;;  %v1252_v28 = vadd.f32 %v3835_v30, %v1223_v35 }
 0x139   : > { %v1352_v56 = vpop.f32.mrf.mxu3 }
 0x13a   : > { %1728 = vmatmul.bf16.gmra.mxu1 %v1417_v17  ;;  %v1267_v23 = vpop.f32.mrf.mxu0 }
 0x13b   : > { %v1294_v25 = vpop.f32.mrf.mxu1  ;;  %v1268_v26 = vadd.f32 %v1267_v23, %v1239_v21 }
 0x13c   : > { %v1295_v57 = vadd.f32 %v1294_v25, %v3860_v27 }
 0x13d   : > { %v1378_v49 = vmax.f32 %v1268_v26, 0.0  ;;  %v1323_v46 = vpop.f32.mrf.mxu2 }
 0x13e   : > { %v1324_v31 = vadd.f32 %v1323_v46, %v1295_v57 }
 0x13f   : > { %v1406_v8 = vpack.c.bf16 %v1378_v49, %v1374_v48 }
 0x140   : > { %v1353_v18 = vadd.f32 %v1352_v56, %v1324_v31 }
 0x141   : > { %1742 = vmatmul.bf16.vlgmr.msrb.gmra.mxu2 %v1406_v8  ;;  %v1354_v39 = vpop.f32.mrf.mxu3  ;;  %v1225_v8 = vadd.f32 %v3855_v15, %v3847_v20 }
 0x142   : > { %v1270_v1 = vpop.f32.mrf.mxu0  ;;  %v1375_v47 = vmax.f32 %v1353_v18, 0.0 }
 0x143   : > { %v1296_v60 = vpop.f32.mrf.mxu1  ;;  %v1271_v36 = vadd.f32 %v1270_v1, %v1242_v19  ;;  %v1254_v41 = vadd.f32 %v3849_v52, %v1225_v8 }
 0x144   : > { %v1297_v6 = vadd.f32 %v1296_v60, %v3860_v27 }
 0x145   : > { %v1325_v11 = vpop.f32.mrf.mxu2  ;;  %v1382_v44 = vmax.f32 %v1271_v36, 0.0 }
 0x146   : > { %v1326_v9 = vadd.f32 %v1325_v11, %v1297_v6 }
 0x148   : > { %v1355_v33 = vadd.f32 %v1354_v39, %v1326_v9 }
 0x149   : > { %v1357_v59 = vpop.f32.mrf.mxu3 }
 0x14a   : > { %v1272_v43 = vpop.f32.mrf.mxu0  ;;  %v1379_v3 = vmax.f32 %v1355_v33, 0.0 }
 0x14b   : > { %v1299_v13 = vpop.f32.mrf.mxu1  ;;  %v1273_v45 = vadd.f32 %v1272_v43, %v1244_v34 }
 0x14c   : > { %v1407_v50 = vpack.c.bf16 %v1379_v3, %v1375_v47  ;;  %v1300_v58 = vadd.f32 %v1299_v13, %v3860_v27 }
 0x14d   : > { %v1386_v51 = vmax.f32 %v1273_v45, 0.0  ;;  %v1328_v54 = vpop.f32.mrf.mxu2 }
 0x14e   : > { %1771 = vmatmul.bf16.vlgmr.msrb.gmra.mxu3 %v1407_v50  ;;  %v1329_v63 = vadd.f32 %v1328_v54, %v1300_v58 }
 0x14f   : > { %v1410_v37 = vpack.c.bf16 %v1386_v51, %v1382_v44 }
 0x150   : > { %v1358_v55 = vadd.f32 %v1357_v59, %v1329_v63 }
 0x151   : > { %1747 = vmatmul.bf16.gmra.mxu2 %v1410_v37  ;;  %v1359_v61 = vpop.f32.mrf.mxu3 }
 0x152   : > { %v1275_v62 = vpop.f32.mrf.mxu0  ;;  %v1383_v17 = vmax.f32 %v1358_v55, 0.0 }
 0x153   : > { %v1301_v38 = vpop.f32.mrf.mxu1  ;;  %v1276_v10 = vadd.f32 %v1275_v62, %v1247_v24 }
 0x154   : > { %v1302_v5 = vadd.f32 %v1301_v38, %v3860_v27 }
 0x155   : > { %v1330_v14 = vpop.f32.mrf.mxu2  ;;  %v1390_v23 = vmax.f32 %v1276_v10, 0.0 }
 0x156   : > { %v1331_v7 = vadd.f32 %v1330_v14, %v1302_v5 }
 0x158   : > { %v1360_v4 = vadd.f32 %v1359_v61, %v1331_v7 }
 0x159   : > { %v1362_v29 = vpop.f32.mrf.mxu3 }
 0x15a   : > { %v1277_v16 = vpop.f32.mrf.mxu0  ;;  %v1387_v32 = vmax.f32 %v1360_v4, 0.0 }
 0x15b   : > { %v1304_v21 = vpop.f32.mrf.mxu1  ;;  %v1278_v22 = vadd.f32 %v1277_v16, %v1249_v12 }
 0x15c   : > { %v1411_v56 = vpack.c.bf16 %v1387_v32, %v1383_v17  ;;  %v1305_v26 = vadd.f32 %v1304_v21, %v3860_v27 }
 0x15d   : > { %v1394_v53 = vmax.f32 %v1278_v22, 0.0  ;;  %v1333_v25 = vpop.f32.mrf.mxu2 }
 0x15e   : > { %1776 = vmatmul.bf16.gmra.mxu3 %v1411_v56  ;;  %v1334_v49 = vadd.f32 %v1333_v25, %v1305_v26 }
 0x15f   : > { %v1414_v2 = vpack.c.bf16 %v1394_v53, %v1390_v23 }
 0x160   : > { %v1363_v31 = vadd.f32 %v1362_v29, %v1334_v49 }
 0x161   : > { %1752 = vmatmul.bf16.gmra.mxu2 %v1414_v2  ;;  %v1364_v57 = vpop.f32.mrf.mxu3 }
 0x162   : > { %v1280_v48 = vpop.f32.mrf.mxu0  ;;  %v1391_v18 = vmax.f32 %v1363_v31, 0.0 }
 0x163   : > { %v1306_v46 = vpop.f32.mrf.mxu1  ;;  %v1281_v11 = vadd.f32 %v1280_v48, %v1252_v28 }
 0x164   : > { %v1307_v39 = vadd.f32 %v1306_v46, %v3860_v27 }
 0x165   : > { %v1335_v1 = vpop.f32.mrf.mxu2  ;;  %v1398_v36 = vmax.f32 %v1281_v11, 0.0 }
 0x166   : > { %v1336_v60 = vadd.f32 %v1335_v1, %v1307_v39 }
 0x168   : > { %v1365_v6 = vadd.f32 %v1364_v57, %v1336_v60 }
 0x169   : > { %v1367_v15 = vpop.f32.mrf.mxu3 }
 0x16a   : > { %v1282_v19 = vpop.f32.mrf.mxu0  ;;  %v1395_v0 = vmax.f32 %v1365_v6, 0.0 }
 0x16b   : > { %v1309_v9 = vpop.f32.mrf.mxu1  ;;  %v1283_v34 = vadd.f32 %v1282_v19, %v1254_v41 }
 0x16c   : > { %v1415_v33 = vpack.c.bf16 %v1395_v0, %v1391_v18  ;;  %v1310_v43 = vadd.f32 %v1309_v9, %v3860_v27 }
 0x16d   : > { %v1402_v59 = vmax.f32 %v1283_v34, 0.0  ;;  %v1338_v20 = vpop.f32.mrf.mxu2 }
 0x16e   : > { %1781 = vmatmul.bf16.gmra.mxu3 %v1415_v33  ;;  %v1339_v47 = vadd.f32 %v1338_v20, %v1310_v43 }
 0x16f   : > { %v1418_v30 = vpack.c.bf16 %v1402_v59, %v1398_v36 }
 0x170   : > { %v1368_v45 = vadd.f32 %v1367_v15, %v1339_v47 }
 0x171   : > { %1757 = vmatmul.bf16.gmra.mxu2 %v1418_v30  ;;  %v1369_v44 = vpop.f32.mrf.mxu3 }
 0x172   : > { %v1399_v54 = vmax.f32 %v1368_v45, 0.0  ;;  %v1685_v62 = vpop.f32.mrf.mxu0 }
 0x173   : > { %v1311_v3 = vpop.f32.mrf.mxu1 }
 0x174   : > { %v1312_v52 = vadd.f32 %v1311_v3, %v3860_v27 }
 0x175   : > { %v1340_v13 = vpop.f32.mrf.mxu2 }
 0x176   : > { %v1341_v50 = vadd.f32 %v1340_v13, %v1312_v52 }
 0x178   : > { %v1370_v51 = vadd.f32 %v1369_v44, %v1341_v50 }
 0x17a   : > { %v1403_v58 = vmax.f32 %v1370_v51, 0.0  ;;  %v1687_v38 = vpop.f32.mrf.mxu0 }
 0x17c   : > { %v1419_v37 = vpack.c.bf16 %v1403_v58, %v1399_v54 }
 0x17e   : > { %1786 = vmatmul.bf16.gmra.mxu3 %v1419_v37 }
 0x182   : > { %v1690_v24 = vpop.f32.mrf.mxu0 }
 0x187   : > { %v1714_v61 = vpop.f32.mrf.mxu1 }
 0x188   : > { %v1715_v46 = vadd.f32 %v1714_v61, %v1685_v62 }
 0x18a   : > { %v1692_v12 = vpop.f32.mrf.mxu0 }
 0x18f   : > { %v1716_v63 = vpop.f32.mrf.mxu1 }
 0x190   : > { %v1717_v35 = vadd.f32 %v1716_v63, %v1687_v38 }
 0x192   : > { %v1695_v16 = vpop.f32.mrf.mxu0 }
 0x197   : > { %v1719_v5 = vpop.f32.mrf.mxu1 }
 0x198   : > { %v1720_v56 = vadd.f32 %v1719_v5, %v1690_v24 }
 0x19a   : > { %v1697_v23 = vpop.f32.mrf.mxu0 }
 0x19f   : > { %v1721_v7 = vpop.f32.mrf.mxu1 }
 0x1a0   : > { %v1722_v21 = vadd.f32 %v1721_v7, %v1692_v12 }
 0x1a2   : > { %v1700_v34 = vpop.f32.mrf.mxu0 }
 0x1a7   : > { %v1724_v29 = vpop.f32.mrf.mxu1 }
 0x1a8   : > { %v1725_v57 = vadd.f32 %v1724_v29, %v1695_v16 }
 0x1aa   : > { %v1702_v50 = vpop.f32.mrf.mxu0 }
 0x1af   : > { %v1726_v22 = vpop.f32.mrf.mxu1 }
 0x1b0   : > { %v1727_v8 = vadd.f32 %v1726_v22, %v1697_v23 }
 0x1b7   : > { %v1729_v6 = vpop.f32.mrf.mxu1 }
 0x1b8   : > { %v1730_v51 = vadd.f32 %v1729_v6, %v1700_v34 }
 0x1bf   : > { %v1731_v52 = vpop.f32.mrf.mxu1 }
 0x1c0   : > { %v1732_v54 = vadd.f32 %v1731_v52, %v1702_v50 }
 0x1c4   : > { %v1743_v42 = vpop.f32.mrf.mxu2 }
 0x1c5   : > { %v1744_v28 = vadd.f32 %v1743_v42, %v1715_v46 }
 0x1cc   : > { %v1745_v40 = vpop.f32.mrf.mxu2 }
 0x1cd   : > { %v1746_v39 = vadd.f32 %v1745_v40, %v1717_v35 }
 0x1d1   : > { %v1772_v14 = vpop.f32.mrf.mxu3 }
 0x1d2   : > { %v1773_v19 = vadd.f32 %v1772_v14, %v1744_v28 }
 0x1d4   : > { %v1748_v55 = vpop.f32.mrf.mxu2 }
 0x1d5   : > { %v1749_v2 = vadd.f32 %v1748_v55, %v1720_v56 }
 0x1d9   : > { %v1774_v27 = vpop.f32.mrf.mxu3 }
 0x1da   : > { %v1775_v31 = vadd.f32 %v1774_v27, %v1746_v39 }
 0x1dc   : > { %v1750_v4 = vpop.f32.mrf.mxu2  ;;  %v1792_v36 = vadd.f32 %v1775_v31, %v1773_v19 }
 0x1dd   : > { %v1751_v53 = vadd.f32 %v1750_v4, %v1722_v21  ;;  %v2637_v21 = vld [vmem:[%s3927_s4] ss:$0 sm:$0xff] }
 0x1de   : > { %v1793_v43 = vrot.slane %v1792_v36, 4 }
 0x1e0   : > { %v1794_v45 = vadd.f32 %v1793_v43, %v1792_v36 }
 0x1e1   : > { %v1777_v10 = vpop.f32.mrf.mxu3 }
 0x1e2   : > { %v1778_v49 = vadd.f32 %v1777_v10, %v1749_v2  ;;  %v1795_v61 = vrot.slane %v1794_v45, 2 }
 0x1e4   : > { %v1753_v17 = vpop.f32.mrf.mxu2  ;;  %v1796_v24 = vadd.f32 %v1795_v61, %v1794_v45 }
 0x1e5   : > { %v1754_v60 = vadd.f32 %v1753_v17, %v1725_v57 }
 0x1e6   : > { %v1797_v4 = vrot.slane %v1796_v24, 1 }
 0x1e9   : > { %v1779_v32 = vpop.f32.mrf.mxu3 }
 0x1ea   : > { %v1780_v48 = vadd.f32 %v1779_v32, %v1751_v53  ;;  %v1798_v32 = vadd.f32 %v1797_v4, %v1796_v24 }
 0x1ec   : > { %v1755_v25 = vpop.f32.mrf.mxu2  ;;  %v1799_v1 = vadd.f32 %v1780_v48, %v1778_v49 }
 0x1ed   : > { %v1756_v41 = vadd.f32 %v1755_v25, %v1727_v8  ;;  %v1820_v25 = vmul.f32 0.00390625, %v1798_v32 }
 0x1ee   : > { %v1800_v18 = vrot.slane %v1799_v1, 4 }
 0x1ef   : > { %v1828_v49 = vadd.f32 %v2637_v21, %v1820_v25 }
 0x1f0   : > { %v1801_v20 = vadd.f32 %v1800_v18, %v1799_v1 }
 0x1f1   : > { %v1782_v26 = vpop.f32.mrf.mxu3 }
 0x1f2   : > { %v1783_v0 = vadd.f32 %v1782_v26, %v1754_v60  ;;  %v1802_v3 = vrot.slane %v1801_v20, 2 }
 0x1f4   : > { %v1758_v33 = vpop.f32.mrf.mxu2  ;;  %v1803_v58 = vadd.f32 %v1802_v3, %v1801_v20 }
 0x1f5   : > { %v1759_v62 = vadd.f32 %v1758_v33, %v1730_v51 }
 0x1f6   : > { %v1804_v38 = vrot.slane %v1803_v58, 1 }
 0x1f8   : > { %v1805_v27 = vadd.f32 %v1804_v38, %v1803_v58 }
 0x1f9   : > { %v1784_v11 = vpop.f32.mrf.mxu3 }
 0x1fa   : > { %v1785_v9 = vadd.f32 %v1784_v11, %v1756_v41  ;;  %v1821_v29 = vmul.f32 0.00390625, %v1805_v27 }
 0x1fc   : > { %v1806_v59 = vadd.f32 %v1785_v9, %v1783_v0  ;;  %v1760_v44 = vpop.f32.mrf.mxu2  ;;  %v1829_v56 = vadd.f32 %v2637_v21, %v1821_v29 }
 0x1fd   : > { %v1761_v42 = vadd.f32 %v1760_v44, %v1732_v54 }
 0x1fe   : > { %v1807_v15 = vrot.slane %v1806_v59, 4  ;;  %v1836_v2 = vrot.slane %v1829_v56, 7 }
 0x200   : > { %v1808_v30 = vadd.f32 %v1807_v15, %v1806_v59  ;;  %v1838_v57 = vsel %vm1837_vm6, %v1836_v2, %v1828_v49 }
 0x201   : > { %v1787_v47 = vpop.f32.mrf.mxu3 }
 0x202   : > { %v1809_v13 = vrot.slane %v1808_v30, 2  ;;  %v1788_v40 = vadd.f32 %v1787_v47, %v1759_v62 }
 0x204   : > { %v1810_v37 = vadd.f32 %v1809_v13, %v1808_v30 }
 0x206   : > { %v1811_v14 = vrot.slane %v1810_v37, 1 }
 0x208   : > { %v1812_v12 = vadd.f32 %v1811_v14, %v1810_v37 }
 0x209   : > { %v1789_v63 = vpop.f32.mrf.mxu3 }
 0x20a   : > { %v1790_v5 = vadd.f32 %v1789_v63, %v1761_v42  ;;  %v1822_v17 = vmul.f32 0.00390625, %v1812_v12 }
 0x20c   : > { %v1813_v55 = vadd.f32 %v1790_v5, %v1788_v40  ;;  %v1830_v53 = vadd.f32 %v2637_v21, %v1822_v17 }
 0x20e   : > { %v1814_v7 = vrot.slane %v1813_v55, 4  ;;  %v1839_v35 = vrot.slane %v1830_v53, 6 }
 0x210   : > { %v1815_v10 = vadd.f32 %v1814_v7, %v1813_v55  ;;  %v1841_v39 = vsel %vm1840_vm7, %v1839_v35, %v1838_v57 }
 0x212   : > { %v1816_v16 = vrot.slane %v1815_v10, 2 }
 0x214   : > { %v1817_v22 = vadd.f32 %v1816_v16, %v1815_v10 }
 0x216   : > { %v1818_v23 = vrot.slane %v1817_v22, 1 }
 0x218   : > { %v1819_v26 = vadd.f32 %v1818_v23, %v1817_v22 }
 0x21a   : > { %v1823_v48 = vmul.f32 0.00390625, %v1819_v26 }
 0x21c   : > { %v1831_v46 = vadd.f32 %v2637_v21, %v1823_v48 }
 0x21e   : > { %v1842_v8 = vrot.slane %v1831_v46, 5 }
 0x220   : > { %v1844_v1 = vsel %vm1843_vm8, %v1842_v8, %v1841_v39 }
 0x221   : > { %1846 = vst [vmem:[%s220_s11] sm:$0xf] %v1844_v1 }
 0x222   : > { %2665 = shalt.err (!%p2662_p3)
}
 0x223   : > { %2598 = dma.vmem_to_hbm [thread:$0]  (%p2769_p5), %s1861_s12, 64, %s1863_s13, %s1848_s30  }
 0x224 PF: > { %p2604_p4 = scmp.ge.s32.totalorder %s2700_s21, 2  ;;  %s1874_s23 = sand.u32 1, %s2688_s18  }
 0x225   : > { %s1875_s6 = scalar_lea.sflag [#allocation3], %s1874_s23 }
 0x226   : > { %p2601_p7 = pnand %p2604_p4, %p2773_p6 }
 0x228   : > { %p2602_p8 = pneg %p2601_p7 }
 0x22a   : > { %2683 = dma.done.wait (%p2602_p8), %s1875_s6, 64  }
 0x22b   : > { %2685 = vsyncadd (%p2602_p8), %s1875_s6, 4294967232  ;;  %p15_p9 = scmp.ge.s32.totalorder %s2755_s24, 4   ;;  %s3935_s18 = smov %s2692_s19 }
 0x22c   : > { %s3936_s19 = smov %s2696_s20  ;;  %s3937_s20 = smov %s2767_s27 }
 0x22d   : > { %s3938_s21 = smov %s2755_s24  ;;  %17 = sbr.rel (!%p15_p9) target bundleno = 3 (0x3), region = 75 }
 0x232   :  { %1881 = vsyncpa [#allocation3], 1 }
 0x233   :  { %1883 = vsyncpa [#allocation3 + $0x1], 1 }

</bundles_post_ra>
